<compile_context>
chip_gen: v6e
topology: v6e:2x2x1
jax: 0.10.0
libtpu: 0.0.40
codegen_flags: <defaults>
</compile_context>

<pallas_src>
import math

import jax
import jax.numpy as jnp
from jax.experimental import pallas as pl
from jax.experimental.pallas import tpu as pltpu

PI = math.pi
HIDDEN = 256
OUT_PAD = 128        # lane-dense padded output width (>= 2*Nsound)
MAX_TK = 2048        # upper bound on the K tile of the first matmul
VMEM_LIMIT = 48 << 20


def _cdiv(a, b):
    return -(-a // b)


def _round_up(a, b):
    return _cdiv(a, b) * b


def _tensorcores_per_chip():
    """Best-effort TensorCores-per-chip query (2 on v7x / megacore parts)."""
    try:
        info = pltpu.get_tpu_info()
        for attr in ("num_cores", "core_count", "num_tensorcores",
                     "tensorcores_per_chip", "cores_per_chip"):
            v = getattr(info, attr, None)
            if isinstance(v, int) and v >= 1:
                return 2 if v >= 2 else 1
    except Exception:
        pass
    try:
        kind = jax.devices()[0].device_kind.lower()
        if ("v7" in kind) or ("v4" in kind) or ("v5p" in kind):
            return 2
    except Exception:
        pass
    return 1


# =============================================================================
# Kernels
# =============================================================================
def _decoder_kernel_fused(x_ref, w1_ref, b1_ref,
                          w2e_ref, b2e_ref, w2a_ref, b2a_ref,
                          w3e_ref, b3e_ref, w3a_ref, b3a_ref,
                          w4e_ref, w4a_ref, lo_ref, hi_ref,
                          o_ref, acc_ref):
    """Both branches fused; grid axis 0 tiles the K (=D) dim of the first matmul.

      x_ref: (B, TK) bf16     w1_ref: (TK, 512) bf16    b1_ref: (1, 512) f32 (BN folded)
      w2*/w3*: (256, 256)     b2*/b3*: (1, 256)
      w4e/w4a: (256, OUT_PAD) columns pre-interleaved, zero-padded
      lo/hi: (1, OUT_PAD) per-lane Hardtanh bounds
      o_ref: (B, OUT_PAD)     acc_ref: (B, 512) f32 scratch
    """
    k = pl.program_id(0)

    @pl.when(k == 0)
    def _init():
        acc_ref[...] = jnp.zeros_like(acc_ref)

    # Partial first-layer matmul for both branches at once (bf16 x bf16 -> f32 acc).
    acc_ref[...] += jnp.dot(x_ref[...], w1_ref[...],
                            preferred_element_type=jnp.float32)

    @pl.when(k == pl.num_programs(0) - 1)
    def _tail():
        # Bias (BN already folded) + ReLU; Dropout is identity in eval mode.
        h = jnp.maximum(acc_ref[...] + b1_ref[...], 0.0)
        he = h[:, :HIDDEN].astype(jnp.bfloat16)
        ha = h[:, HIDDEN:].astype(jnp.bfloat16)

        he = jnp.maximum(
            jnp.dot(he, w2e_ref[...], preferred_element_type=jnp.float32) + b2e_ref[...],
            0.0).astype(jnp.bfloat16)
        ha = jnp.maximum(
            jnp.dot(ha, w2a_ref[...], preferred_element_type=jnp.float32) + b2a_ref[...],
            0.0).astype(jnp.bfloat16)

        he = jnp.maximum(
            jnp.dot(he, w3e_ref[...], preferred_element_type=jnp.float32) + b3e_ref[...],
            0.0).astype(jnp.bfloat16)
        ha = jnp.maximum(
            jnp.dot(ha, w3a_ref[...], preferred_element_type=jnp.float32) + b3a_ref[...],
            0.0).astype(jnp.bfloat16)

        # Final projection (no bias); columns pre-interleaved -> [e0, a0, e1, a1, ...]
        y = (jnp.dot(he, w4e_ref[...], preferred_element_type=jnp.float32)
             + jnp.dot(ha, w4a_ref[...], preferred_element_type=jnp.float32))
        o_ref[...] = jnp.clip(y, lo_ref[...], hi_ref[...]).astype(o_ref.dtype)


def _decoder_kernel_dual(x_ref, w1_ref, b1_ref, w2_ref, b2_ref, w3_ref, b3_ref,
                         w4_ref, lo_ref, hi_ref, o_ref, acc_ref):
    """One branch per grid-axis-0 iteration (sharded across TensorCores when
    axis 0 is 'parallel' and the chip has 2 TCs).  Grid axis 1 tiles K.

      x_ref: (B, TK) bf16        w1_ref: (1, TK, 256) bf16    b1_ref: (1, 1, 256) f32
      w2/w3: (1, 256, 256)       b2/b3: (1, 1, 256)
      w4: (1, 256, OUT_PAD)      lo/hi: (1, 1, OUT_PAD)
      o_ref: (1, B, OUT_PAD)     acc_ref: (B, 256) f32 scratch
    """
    k = pl.program_id(1)

    @pl.when(k == 0)
    def _init():
        acc_ref[...] = jnp.zeros_like(acc_ref)

    acc_ref[...] += jnp.dot(x_ref[...], w1_ref[0],
                            preferred_element_type=jnp.float32)

    @pl.when(k == pl.num_programs(1) - 1)
    def _tail():
        h = jnp.maximum(acc_ref[...] + b1_ref[0], 0.0).astype(jnp.bfloat16)
        h = jnp.maximum(
            jnp.dot(h, w2_ref[0], preferred_element_type=jnp.float32) + b2_ref[0],
            0.0).astype(jnp.bfloat16)
        h = jnp.maximum(
            jnp.dot(h, w3_ref[0], preferred_element_type=jnp.float32) + b3_ref[0],
            0.0).astype(jnp.bfloat16)
        y = jnp.dot(h, w4_ref[0], preferred_element_type=jnp.float32)
        o_ref[0] = jnp.clip(y, lo_ref[0], hi_ref[0]).astype(o_ref.dtype)


# =============================================================================
# Parameter preparation (call ONCE; reuse the returned bundle across calls)
# =============================================================================
def _init_branch_params(key, enc_out_size, nsound):
    """Raw FC_4 parameters (PyTorch layout, f32). BN in eval mode (running stats)."""
    ks = jax.random.split(key, 11)
    s = 0.05
    return dict(
        w1=jax.random.normal(ks[0], (enc_out_size, HIDDEN), jnp.float32) * s,
        b1=jax.random.normal(ks[1], (1, HIDDEN), jnp.float32) * s,
        w2=jax.random.normal(ks[2], (HIDDEN, HIDDEN), jnp.float32) * s,
        b2=jax.random.normal(ks[3], (1, HIDDEN), jnp.float32) * s,
        w3=jax.random.normal(ks[4], (HIDDEN, HIDDEN), jnp.float32) * s,
        b3=jax.random.normal(ks[5], (1, HIDDEN), jnp.float32) * s,
        w4=jax.random.normal(ks[6], (HIDDEN, nsound), jnp.float32) * s,
        gamma=1.0 + 0.1 * jax.random.normal(ks[7], (1, HIDDEN), jnp.float32),
        beta=0.1 * jax.random.normal(ks[8], (1, HIDDEN), jnp.float32),
        mean=0.1 * jax.random.normal(ks[9], (1, HIDDEN), jnp.float32),
        var=jnp.abs(1.0 + 0.1 * jax.random.normal(ks[10], (1, HIDDEN), jnp.float32)),
    )


def _fold_bn(p, eps=1e-5):
    scale = p["gamma"] / jnp.sqrt(p["var"] + eps)
    shift = p["beta"] - p["mean"] * scale
    return p["w1"] * scale, p["b1"] * scale + shift


def prepare_decoder_params(params_elev, params_azim, nsound, *, layout=None):
    """Fold BN, pad/interleave/cast weights. Do this ONCE, outside the hot path."""
    assert 2 * nsound <= OUT_PAD, f"Nsound={nsound} exceeds OUT_PAD={OUT_PAD} lanes"
    if layout is None:
        layout = "dual" if _tensorcores_per_chip() >= 2 else "fused"
    assert layout in ("fused", "dual")

    w1e, b1e = _fold_bn(params_elev)
    w1a, b1a = _fold_bn(params_azim)
    D = int(w1e.shape[0])

    # Adaptive K tiling (big tiles amortize ~0.35us/step; no waste for small D).
    num_k = max(1, _cdiv(D, MAX_TK))
    tk = _round_up(_cdiv(D, num_k), 256)
    d_pad = num_k * tk

    pad_k = lambda w: jnp.pad(w, ((0, d_pad - D), (0, 0)))
    bf = lambda a: a.astype(jnp.bfloat16)

    # Final projections pre-interleaved onto a lane-dense 128-wide output:
    # even lanes = elev, odd lanes = azim.  Per-lane Hardtanh bounds likewise.
    w4e = jnp.zeros((HIDDEN, OUT_PAD), jnp.float32).at[:, 0:2 * nsound:2].set(params_elev["w4"])
    w4a = jnp.zeros((HIDDEN, OUT_PAD), jnp.float32).at[:, 1:2 * nsound:2].set(params_azim["w4"])
    lo_e = jnp.zeros((1, OUT_PAD), jnp.float32).at[0, 0:2 * nsound:2].set(-PI / 4.0)
    hi_e = jnp.zeros((1, OUT_PAD), jnp.float32).at[0, 0:2 * nsound:2].set(PI / 2.0)
    lo_a = jnp.zeros((1, OUT_PAD), jnp.float32).at[0, 1:2 * nsound:2].set(0.0)
    hi_a = jnp.zeros((1, OUT_PAD), jnp.float32).at[0, 1:2 * nsound:2].set(2.0 * PI)

    common = dict(layout=layout, D=D, d_pad=d_pad, tk=tk, num_k=num_k, nsound=nsound)

    if layout == "fused":
        return dict(
            common,
            w1=bf(jnp.concatenate([pad_k(w1e), pad_k(w1a)], axis=1)),   # (d_pad, 512)
            b1=jnp.concatenate([b1e, b1a], axis=1),                     # (1, 512) f32
            w2e=bf(params_elev["w2"]), b2e=params_elev["b2"],
            w2a=bf(params_azim["w2"]), b2a=params_azim["b2"],
            w3e=bf(params_elev["w3"]), b3e=params_elev["b3"],
            w3a=bf(params_azim["w3"]), b3a=params_azim["b3"],
            w4e=bf(w4e), w4a=bf(w4a),
            lo=lo_e + lo_a, hi=hi_e + hi_a,      # merged per-lane bounds
        )

    # "dual": branch-stacked weights so a size-2 "parallel" grid axis puts each
    # branch on its own TensorCore.  Branch 0 -> elev (even output lanes),
    # branch 1 -> azim (odd lanes); the unused lanes of each branch clamp to 0.
    stack = lambda a, b: jnp.stack([a, b], axis=0)
    return dict(
        common,
        w1s=bf(stack(pad_k(w1e), pad_k(w1a))),                          # (2, d_pad, 256)
        b1s=stack(b1e, b1a),                                            # (2, 1, 256) f32
        w2s=bf(stack(params_elev["w2"], params_azim["w2"])),
        b2s=stack(params_elev["b2"], params_azim["b2"]),
        w3s=bf(stack(params_elev["w3"], params_azim["w3"])),
        b3s=stack(params_elev["b3"], params_azim["b3"]),
        w4s=bf(stack(w4e, w4a)),                                        # (2, 256, OUT_PAD)
        los=stack(lo_e, lo_a), his=stack(hi_e, hi_a),                   # (2, 1, OUT_PAD)
    )


# =============================================================================
# Forward wrappers
# =============================================================================
def _forward_fused(x, kp, B):
    """Single 'arbitrary' K axis; one call computes both branches (x read once)."""
    tk, num_k, d_pad = kp["tk"], kp["num_k"], kp["d_pad"]
    inputs = (x, kp["w1"], kp["b1"],
              kp["w2e"], kp["b2e"], kp["w2a"], kp["b2a"],
              kp["w3e"], kp["b3e"], kp["w3a"], kp["b3a"],
              kp["w4e"], kp["w4a"], kp["lo"], kp["hi"])

    def resident(a):
        n = a.ndim
        return pl.BlockSpec(a.shape, lambda k, _n=n: (0,) * _n)

    in_specs = [
        pl.BlockSpec((B, tk), lambda k: (0, k)),            # x: K-tiled
        pl.BlockSpec((tk, 2 * HIDDEN), lambda k: (k, 0)),   # w1: K-tiled, double-buffered
    ] + [resident(a) for a in inputs[2:]]                    # tail weights resident

    macs = 2 * (d_pad * HIDDEN + 2 * HIDDEN * HIDDEN + HIDDEN * OUT_PAD)
    bytes_accessed = int(sum(int(a.size) * a.dtype.itemsize for a in inputs)
                         + B * OUT_PAD * 4)

    out = pl.pallas_call(
        _decoder_kernel_fused,
        out_shape=jax.ShapeDtypeStruct((B, OUT_PAD), jnp.float32),
        grid_spec=pltpu.PrefetchScalarGridSpec(
            num_scalar_prefetch=0,
            grid=(num_k,),
            in_specs=in_specs,
            out_specs=pl.BlockSpec((B, OUT_PAD), lambda k: (0, 0)),
            scratch_shapes=[pltpu.VMEM((B, 2 * HIDDEN), jnp.float32)],
        ),
        compiler_params=pltpu.CompilerParams(
            dimension_semantics=("arbitrary",),              # K is a reduction axis
            vmem_limit_bytes=VMEM_LIMIT,
        ),
        cost_estimate=pl.CostEstimate(
            flops=int(2 * B * macs), transcendentals=0, bytes_accessed=bytes_accessed),
    )(*inputs)
    return out[:, :2 * kp["nsound"]]


def _forward_dual(x, kp, B):
    """Grid (2, num_k): branch axis 'parallel' (one TC per branch on 2-TC chips),
    K axis 'arbitrary'.  Branch 0 writes even output lanes (elev), branch 1 odd
    lanes (azim); summing the two slabs yields the interleaved result."""
    tk, num_k, d_pad = kp["tk"], kp["num_k"], kp["d_pad"]
    inputs = (x, kp["w1s"], kp["b1s"], kp["w2s"], kp["b2s"],
              kp["w3s"], kp["b3s"], kp["w4s"], kp["los"], kp["his"])

    def per_branch(a):
        n = a.ndim
        return pl.BlockSpec((1,) + a.shape[1:],
                            lambda b, k, _n=n: (b,) + (0,) * (_n - 1))

    in_specs = [
        pl.BlockSpec((B, tk), lambda b, k: (0, k)),             # x: K-tiled (per core)
        pl.BlockSpec((1, tk, HIDDEN), lambda b, k: (b, k, 0)),  # w1: branch- & K-tiled
    ] + [per_branch(a) for a in inputs[2:]]                      # tail weights per branch

    macs = 2 * (d_pad * HIDDEN + 2 * HIDDEN * HIDDEN + HIDDEN * OUT_PAD)
    bytes_accessed = int(2 * int(x.size) * x.dtype.itemsize      # x streamed per branch
                         + sum(int(a.size) * a.dtype.itemsize for a in inputs[1:])
                         + 2 * B * OUT_PAD * 4)

    out = pl.pallas_call(
        _decoder_kernel_dual,
        out_shape=jax.ShapeDtypeStruct((2, B, OUT_PAD), jnp.float32),
        grid_spec=pltpu.PrefetchScalarGridSpec(
            num_scalar_prefetch=0,
            grid=(2, num_k),
            in_specs=in_specs,
            out_specs=pl.BlockSpec((1, B, OUT_PAD), lambda b, k: (b, 0, 0)),
            scratch_shapes=[pltpu.VMEM((B, HIDDEN), jnp.float32)],
        ),
        compiler_params=pltpu.CompilerParams(
            dimension_semantics=("parallel", "arbitrary"),
            vmem_limit_bytes=VMEM_LIMIT,
        ),
        cost_estimate=pl.CostEstimate(
            flops=int(2 * B * macs), transcendentals=0, bytes_accessed=bytes_accessed),
    )(*inputs)

    y = out[0] + out[1]                 # disjoint lanes -> interleaved [e0, a0, e1, a1, ...]
    return y[:, :2 * kp["nsound"]]


def decoder_ea_reg_forward(enc_out, prepared):
    """enc_out: (B, C, H, W) NCHW. Returns (B, 2*Nsound) interleaved [elev_i, azim_i]."""
    B = enc_out.shape[0]
    # torch.flatten(enc_out, 1, -1); pre-cast x to bf16 (halves x HBM traffic).
    x = enc_out.reshape(B, -1).astype(jnp.bfloat16)
    D = x.shape[1]
    assert D == prepared["D"], (D, prepared["D"])
    d_pad = prepared["d_pad"]
    if d_pad != D:
        x = jnp.pad(x, ((0, 0), (0, d_pad - D)))
    if prepared["layout"] == "dual":
        return _forward_dual(x, prepared, B)
    return _forward_fused(x, prepared, B)


# =============================================================================
# Pure-JAX reference (f32, eval-mode BN, Dropout identity)
# =============================================================================
def _reference_forward(enc_out, pe, pa, nsound):
    B = enc_out.shape[0]
    x = enc_out.reshape(B, -1).astype(jnp.float32)
    eps = 1e-5

    def branch(p, lo, hi):
        h = x @ p["w1"] + p["b1"]
        h = p["gamma"] * (h - p["mean"]) / jnp.sqrt(p["var"] + eps) + p["beta"]
        h = jnp.maximum(h, 0.0)
        h = jnp.maximum(h @ p["w2"] + p["b2"], 0.0)
        h = jnp.maximum(h @ p["w3"] + p["b3"], 0.0)
        return jnp.clip(h @ p["w4"], lo, hi)

    e = branch(pe, -PI / 4.0, PI / 2.0)
    a = branch(pa, 0.0, 2.0 * PI)
    return jnp.stack([e, a], axis=-1).reshape(B, 2 * nsound)


if __name__ == "__main__":
    key = jax.random.PRNGKey(0)
    k_x, k_e, k_a = jax.random.split(key, 3)

    B, C, H, W = 8, 4, 8, 8
    Nsound = 2
    enc_out_size = C * H * W

    enc_out = jax.random.normal(k_x, (B, C, H, W), jnp.float32)
    params_elev = _init_branch_params(k_e, enc_out_size, Nsound)
    params_azim = _init_branch_params(k_a, enc_out_size, Nsound)

    ref = _reference_forward(enc_out, params_elev, params_azim, Nsound)

    # Exercise BOTH layouts (the "dual" 2-TensorCore layout is also correct on
    # single-TC chips, merely serialized along the branch axis).
    for layout in ("fused", "dual"):
        prepared = prepare_decoder_params(params_elev, params_azim, Nsound, layout=layout)
        out = jax.block_until_ready(decoder_ea_reg_forward(enc_out, prepared))
        assert out.shape == (B, 2 * Nsound), (layout, out.shape)
        assert jnp.allclose(out, ref, atol=5e-2, rtol=5e-2), f"{layout}: mismatch vs reference"

    # Production path: prepare weights ONCE (auto layout from hardware), jit the forward.
    prepared = prepare_decoder_params(params_elev, params_azim, Nsound)
    fwd = jax.jit(lambda e: decoder_ea_reg_forward(e, prepared))
    out = jax.block_until_ready(fwd(enc_out))
    assert out.shape == (B, 2 * Nsound), out.shape
    assert jnp.allclose(out, ref, atol=5e-2, rtol=5e-2), "auto layout: mismatch vs reference"

    print("KERNEL_OK")
</pallas_src>

<mosaic_0001>
module attributes {stable_mosaic.version = 11 : i64} {
  func.func @_decoder_kernel_fused(%arg0: i32, %arg1: memref<8x256xbf16, #tpu.memory_space<vmem>>, %arg2: memref<256x512xbf16, #tpu.memory_space<vmem>>, %arg3: memref<1x512xf32, #tpu.memory_space<vmem>>, %arg4: memref<256x256xbf16, #tpu.memory_space<vmem>>, %arg5: memref<1x256xf32, #tpu.memory_space<vmem>>, %arg6: memref<256x256xbf16, #tpu.memory_space<vmem>>, %arg7: memref<1x256xf32, #tpu.memory_space<vmem>>, %arg8: memref<256x256xbf16, #tpu.memory_space<vmem>>, %arg9: memref<1x256xf32, #tpu.memory_space<vmem>>, %arg10: memref<256x256xbf16, #tpu.memory_space<vmem>>, %arg11: memref<1x256xf32, #tpu.memory_space<vmem>>, %arg12: memref<256x128xbf16, #tpu.memory_space<vmem>>, %arg13: memref<256x128xbf16, #tpu.memory_space<vmem>>, %arg14: memref<1x128xf32, #tpu.memory_space<vmem>>, %arg15: memref<1x128xf32, #tpu.memory_space<vmem>>, %arg16: memref<8x128xf32, #tpu.memory_space<vmem>>, %arg17: memref<8x512xf32, #tpu.memory_space<vmem>>) attributes {dimension_semantics = [#tpu.dimension_semantics<arbitrary>], iteration_bounds = array<i64: 1>, scalar_prefetch = 0 : i64, scratch_operands = 1 : i64, tpu.core_type = #tpu.core_type<tc>, window_params = [{transform_indices = @transform_0, window_bounds = array<i64: 8, 256>}, {transform_indices = @transform_1, window_bounds = array<i64: 256, 512>}, {pipeline_mode = #tpu.pipeline_mode<synchronous>, transform_indices = @transform_2, window_bounds = array<i64: 1, 512>}, {pipeline_mode = #tpu.pipeline_mode<synchronous>, transform_indices = @transform_3, window_bounds = array<i64: 256, 256>}, {pipeline_mode = #tpu.pipeline_mode<synchronous>, transform_indices = @transform_4, window_bounds = array<i64: 1, 256>}, {pipeline_mode = #tpu.pipeline_mode<synchronous>, transform_indices = @transform_5, window_bounds = array<i64: 256, 256>}, {pipeline_mode = #tpu.pipeline_mode<synchronous>, transform_indices = @transform_6, window_bounds = array<i64: 1, 256>}, {pipeline_mode = #tpu.pipeline_mode<synchronous>, transform_indices = @transform_7, window_bounds = array<i64: 256, 256>}, {pipeline_mode = #tpu.pipeline_mode<synchronous>, transform_indices = @transform_8, window_bounds = array<i64: 1, 256>}, {pipeline_mode = #tpu.pipeline_mode<synchronous>, transform_indices = @transform_9, window_bounds = array<i64: 256, 256>}, {pipeline_mode = #tpu.pipeline_mode<synchronous>, transform_indices = @transform_10, window_bounds = array<i64: 1, 256>}, {pipeline_mode = #tpu.pipeline_mode<synchronous>, transform_indices = @transform_11, window_bounds = array<i64: 256, 128>}, {pipeline_mode = #tpu.pipeline_mode<synchronous>, transform_indices = @transform_12, window_bounds = array<i64: 256, 128>}, {pipeline_mode = #tpu.pipeline_mode<synchronous>, transform_indices = @transform_13, window_bounds = array<i64: 1, 128>}, {pipeline_mode = #tpu.pipeline_mode<synchronous>, transform_indices = @transform_14, window_bounds = array<i64: 1, 128>}, {pipeline_mode = #tpu.pipeline_mode<synchronous>, transform_indices = @transform_15, window_bounds = array<i64: 8, 128>}]} {
    %c0_i32 = arith.constant 0 : i32
    %0 = arith.cmpi eq, %arg0, %c0_i32 : i32
    %1 = arith.extui %0 : i1 to i32
    %c0_i32_0 = arith.constant 0 : i32
    %2 = arith.cmpi ne, %1, %c0_i32_0 : i32
    scf.if %2 {
      %cst_10 = arith.constant 0.000000e+00 : f32
      %12 = vector.broadcast %cst_10 : f32 to vector<8x512xf32>
      %c0_11 = arith.constant 0 : index
      %c0_12 = arith.constant 0 : index
      %13 = vector.load %arg17[%c0_11, %c0_12] : memref<8x512xf32, #tpu.memory_space<vmem>>, vector<8x512xf32>
      tpu.vector_store %arg17[%c0_11, %c0_12], %12 {strides = array<i32>} : memref<8x512xf32, #tpu.memory_space<vmem>>, vector<8x512xf32>,
    } else {
    }
    %c0 = arith.constant 0 : index
    %c0_1 = arith.constant 0 : index
    %3 = vector.load %arg17[%c0, %c0_1] : memref<8x512xf32, #tpu.memory_space<vmem>>, vector<8x512xf32>
    %c0_2 = arith.constant 0 : index
    %c0_3 = arith.constant 0 : index
    %4 = vector.load %arg1[%c0_2, %c0_3] : memref<8x256xbf16, #tpu.memory_space<vmem>>, vector<8x256xbf16>
    %c0_4 = arith.constant 0 : index
    %c0_5 = arith.constant 0 : index
    %5 = vector.load %arg2[%c0_4, %c0_5] : memref<256x512xbf16, #tpu.memory_space<vmem>>, vector<256x512xbf16>
    %cst = arith.constant dense<0.000000e+00> : vector<8x512xf32>
    %6 = tpu.matmul %4, %5, %cst {dimension_numbers = #tpu.dot_dimension_numbers<[1], [0], [0], [1], [0, 0, 1, 1], [], []>} : vector<8x256xbf16>, vector<256x512xbf16>, vector<8x512xf32> -> vector<8x512xf32>
    %7 = arith.addf %3, %6 : vector<8x512xf32>
    %c0_6 = arith.constant 0 : index
    %c0_7 = arith.constant 0 : index
    %8 = vector.load %arg17[%c0_6, %c0_7] : memref<8x512xf32, #tpu.memory_space<vmem>>, vector<8x512xf32>
    tpu.vector_store %arg17[%c0_6, %c0_7], %7 {strides = array<i32>} : memref<8x512xf32, #tpu.memory_space<vmem>>, vector<8x512xf32>,
    %c0_i32_8 = arith.constant 0 : i32
    %9 = arith.cmpi eq, %arg0, %c0_i32_8 : i32
    %10 = arith.extui %9 : i1 to i32
    %c0_i32_9 = arith.constant 0 : i32
    %11 = arith.cmpi ne, %10, %c0_i32_9 : i32
    scf.if %11 {
      %c0_10 = arith.constant 0 : index
      %c0_11 = arith.constant 0 : index
      %12 = vector.load %arg17[%c0_10, %c0_11] : memref<8x512xf32, #tpu.memory_space<vmem>>, vector<8x512xf32>
      %c0_12 = arith.constant 0 : index
      %c0_13 = arith.constant 0 : index
      %13 = vector.load %arg3[%c0_12, %c0_13] : memref<1x512xf32, #tpu.memory_space<vmem>>, vector<1x512xf32>
      %14 = vector.broadcast %13 : vector<1x512xf32> to vector<8x512xf32>
      %15 = arith.addf %12, %14 : vector<8x512xf32>
      %cst_14 = arith.constant 0.000000e+00 : f32
      %16 = vector.broadcast %cst_14 : f32 to vector<8x512xf32>
      %17 = arith.maximumf %15, %16 : vector<8x512xf32>
      %18 = vector.extract_strided_slice %17 {offsets = [0, 0], sizes = [8, 256], strides = [1, 1]} : vector<8x512xf32> to vector<8x256xf32>
      %19 = arith.truncf %18 : vector<8x256xf32> to vector<8x256xbf16>
      %20 = vector.extract_strided_slice %17 {offsets = [0, 256], sizes = [8, 256], strides = [1, 1]} : vector<8x512xf32> to vector<8x256xf32>
      %21 = arith.truncf %20 : vector<8x256xf32> to vector<8x256xbf16>
      %c0_15 = arith.constant 0 : index
      %c0_16 = arith.constant 0 : index
      %22 = vector.load %arg4[%c0_15, %c0_16] : memref<256x256xbf16, #tpu.memory_space<vmem>>, vector<256x256xbf16>
      %cst_17 = arith.constant dense<0.000000e+00> : vector<8x256xf32>
      %23 = tpu.matmul %19, %22, %cst_17 {dimension_numbers = #tpu.dot_dimension_numbers<[1], [0], [0], [1], [0, 0, 1, 1], [], []>} : vector<8x256xbf16>, vector<256x256xbf16>, vector<8x256xf32> -> vector<8x256xf32>
      %c0_18 = arith.constant 0 : index
      %c0_19 = arith.constant 0 : index
      %24 = vector.load %arg5[%c0_18, %c0_19] : memref<1x256xf32, #tpu.memory_space<vmem>>, vector<1x256xf32>
      %25 = vector.broadcast %24 : vector<1x256xf32> to vector<8x256xf32>
      %26 = arith.addf %23, %25 : vector<8x256xf32>
      %cst_20 = arith.constant 0.000000e+00 : f32
      %27 = vector.broadcast %cst_20 : f32 to vector<8x256xf32>
      %28 = arith.maximumf %26, %27 : vector<8x256xf32>
      %29 = arith.truncf %28 : vector<8x256xf32> to vector<8x256xbf16>
      %c0_21 = arith.constant 0 : index
      %c0_22 = arith.constant 0 : index
      %30 = vector.load %arg6[%c0_21, %c0_22] : memref<256x256xbf16, #tpu.memory_space<vmem>>, vector<256x256xbf16>
      %cst_23 = arith.constant dense<0.000000e+00> : vector<8x256xf32>
      %31 = tpu.matmul %21, %30, %cst_23 {dimension_numbers = #tpu.dot_dimension_numbers<[1], [0], [0], [1], [0, 0, 1, 1], [], []>} : vector<8x256xbf16>, vector<256x256xbf16>, vector<8x256xf32> -> vector<8x256xf32>
      %c0_24 = arith.constant 0 : index
      %c0_25 = arith.constant 0 : index
      %32 = vector.load %arg7[%c0_24, %c0_25] : memref<1x256xf32, #tpu.memory_space<vmem>>, vector<1x256xf32>
      %33 = vector.broadcast %32 : vector<1x256xf32> to vector<8x256xf32>
      %34 = arith.addf %31, %33 : vector<8x256xf32>
      %cst_26 = arith.constant 0.000000e+00 : f32
      %35 = vector.broadcast %cst_26 : f32 to vector<8x256xf32>
      %36 = arith.maximumf %34, %35 : vector<8x256xf32>
      %37 = arith.truncf %36 : vector<8x256xf32> to vector<8x256xbf16>
      %c0_27 = arith.constant 0 : index
      %c0_28 = arith.constant 0 : index
      %38 = vector.load %arg8[%c0_27, %c0_28] : memref<256x256xbf16, #tpu.memory_space<vmem>>, vector<256x256xbf16>
      %cst_29 = arith.constant dense<0.000000e+00> : vector<8x256xf32>
      %39 = tpu.matmul %29, %38, %cst_29 {dimension_numbers = #tpu.dot_dimension_numbers<[1], [0], [0], [1], [0, 0, 1, 1], [], []>} : vector<8x256xbf16>, vector<256x256xbf16>, vector<8x256xf32> -> vector<8x256xf32>
      %c0_30 = arith.constant 0 : index
      %c0_31 = arith.constant 0 : index
      %40 = vector.load %arg9[%c0_30, %c0_31] : memref<1x256xf32, #tpu.memory_space<vmem>>, vector<1x256xf32>
      %41 = vector.broadcast %40 : vector<1x256xf32> to vector<8x256xf32>
      %42 = arith.addf %39, %41 : vector<8x256xf32>
      %cst_32 = arith.constant 0.000000e+00 : f32
      %43 = vector.broadcast %cst_32 : f32 to vector<8x256xf32>
      %44 = arith.maximumf %42, %43 : vector<8x256xf32>
      %45 = arith.truncf %44 : vector<8x256xf32> to vector<8x256xbf16>
      %c0_33 = arith.constant 0 : index
      %c0_34 = arith.constant 0 : index
      %46 = vector.load %arg10[%c0_33, %c0_34] : memref<256x256xbf16, #tpu.memory_space<vmem>>, vector<256x256xbf16>
      %cst_35 = arith.constant dense<0.000000e+00> : vector<8x256xf32>
      %47 = tpu.matmul %37, %46, %cst_35 {dimension_numbers = #tpu.dot_dimension_numbers<[1], [0], [0], [1], [0, 0, 1, 1], [], []>} : vector<8x256xbf16>, vector<256x256xbf16>, vector<8x256xf32> -> vector<8x256xf32>
      %c0_36 = arith.constant 0 : index
      %c0_37 = arith.constant 0 : index
      %48 = vector.load %arg11[%c0_36, %c0_37] : memref<1x256xf32, #tpu.memory_space<vmem>>, vector<1x256xf32>
      %49 = vector.broadcast %48 : vector<1x256xf32> to vector<8x256xf32>
      %50 = arith.addf %47, %49 : vector<8x256xf32>
      %cst_38 = arith.constant 0.000000e+00 : f32
      %51 = vector.broadcast %cst_38 : f32 to vector<8x256xf32>
      %52 = arith.maximumf %50, %51 : vector<8x256xf32>
      %53 = arith.truncf %52 : vector<8x256xf32> to vector<8x256xbf16>
      %c0_39 = arith.constant 0 : index
      %c0_40 = arith.constant 0 : index
      %54 = vector.load %arg12[%c0_39, %c0_40] : memref<256x128xbf16, #tpu.memory_space<vmem>>, vector<256x128xbf16>
      %cst_41 = arith.constant dense<0.000000e+00> : vector<8x128xf32>
      %55 = tpu.matmul %45, %54, %cst_41 {dimension_numbers = #tpu.dot_dimension_numbers<[1], [0], [0], [1], [0, 0, 1, 1], [], []>} : vector<8x256xbf16>, vector<256x128xbf16>, vector<8x128xf32> -> vector<8x128xf32>
      %c0_42 = arith.constant 0 : index
      %c0_43 = arith.constant 0 : index
      %56 = vector.load %arg13[%c0_42, %c0_43] : memref<256x128xbf16, #tpu.memory_space<vmem>>, vector<256x128xbf16>
      %cst_44 = arith.constant dense<0.000000e+00> : vector<8x128xf32>
      %57 = tpu.matmul %53, %56, %cst_44 {dimension_numbers = #tpu.dot_dimension_numbers<[1], [0], [0], [1], [0, 0, 1, 1], [], []>} : vector<8x256xbf16>, vector<256x128xbf16>, vector<8x128xf32> -> vector<8x128xf32>
      %58 = arith.addf %55, %57 : vector<8x128xf32>
      %c0_45 = arith.constant 0 : index
      %c0_46 = arith.constant 0 : index
      %59 = vector.load %arg14[%c0_45, %c0_46] : memref<1x128xf32, #tpu.memory_space<vmem>>, vector<1x128xf32>
      %c0_47 = arith.constant 0 : index
      %c0_48 = arith.constant 0 : index
      %60 = vector.load %arg15[%c0_47, %c0_48] : memref<1x128xf32, #tpu.memory_space<vmem>>, vector<1x128xf32>
      %61 = vector.broadcast %59 : vector<1x128xf32> to vector<8x128xf32>
      %62 = arith.maximumf %61, %58 : vector<8x128xf32>
      %63 = vector.broadcast %60 : vector<1x128xf32> to vector<8x128xf32>
      %64 = arith.minimumf %63, %62 : vector<8x128xf32>
      %c0_49 = arith.constant 0 : index
      %c0_50 = arith.constant 0 : index
      %65 = vector.load %arg16[%c0_49, %c0_50] : memref<8x128xf32, #tpu.memory_space<vmem>>, vector<8x128xf32>
      tpu.vector_store %arg16[%c0_49, %c0_50], %64 {strides = array<i32>} : memref<8x128xf32, #tpu.memory_space<vmem>>, vector<8x128xf32>,
    } else {
    }
    return
  }
  func.func @transform_0(%arg0: i32) -> (i32, i32) {
    %c0_i32 = arith.constant 0 : i32
    %c0_i32_0 = arith.constant 0 : i32
    return %c0_i32, %arg0 : i32, i32
  }
  func.func @transform_1(%arg0: i32) -> (i32, i32) {
    %c0_i32 = arith.constant 0 : i32
    %c0_i32_0 = arith.constant 0 : i32
    return %arg0, %c0_i32 : i32, i32
  }
  func.func @transform_2(%arg0: i32) -> (i32, i32) {
    %c0_i32 = arith.constant 0 : i32
    %c0_i32_0 = arith.constant 0 : i32
    %c0_i32_1 = arith.constant 0 : i32
    return %c0_i32, %c0_i32_0 : i32, i32
  }
  func.func @transform_3(%arg0: i32) -> (i32, i32) {
    %c0_i32 = arith.constant 0 : i32
    %c0_i32_0 = arith.constant 0 : i32
    %c0_i32_1 = arith.constant 0 : i32
    return %c0_i32, %c0_i32_0 : i32, i32
  }
  func.func @transform_4(%arg0: i32) -> (i32, i32) {
    %c0_i32 = arith.constant 0 : i32
    %c0_i32_0 = arith.constant 0 : i32
    %c0_i32_1 = arith.constant 0 : i32
    return %c0_i32, %c0_i32_0 : i32, i32
  }
  func.func @transform_5(%arg0: i32) -> (i32, i32) {
    %c0_i32 = arith.constant 0 : i32
    %c0_i32_0 = arith.constant 0 : i32
    %c0_i32_1 = arith.constant 0 : i32
    return %c0_i32, %c0_i32_0 : i32, i32
  }
  func.func @transform_6(%arg0: i32) -> (i32, i32) {
    %c0_i32 = arith.constant 0 : i32
    %c0_i32_0 = arith.constant 0 : i32
    %c0_i32_1 = arith.constant 0 : i32
    return %c0_i32, %c0_i32_0 : i32, i32
  }
  func.func @transform_7(%arg0: i32) -> (i32, i32) {
    %c0_i32 = arith.constant 0 : i32
    %c0_i32_0 = arith.constant 0 : i32
    %c0_i32_1 = arith.constant 0 : i32
    return %c0_i32, %c0_i32_0 : i32, i32
  }
  func.func @transform_8(%arg0: i32) -> (i32, i32) {
    %c0_i32 = arith.constant 0 : i32
    %c0_i32_0 = arith.constant 0 : i32
    %c0_i32_1 = arith.constant 0 : i32
    return %c0_i32, %c0_i32_0 : i32, i32
  }
  func.func @transform_9(%arg0: i32) -> (i32, i32) {
    %c0_i32 = arith.constant 0 : i32
    %c0_i32_0 = arith.constant 0 : i32
    %c0_i32_1 = arith.constant 0 : i32
    return %c0_i32, %c0_i32_0 : i32, i32
  }
  func.func @transform_10(%arg0: i32) -> (i32, i32) {
    %c0_i32 = arith.constant 0 : i32
    %c0_i32_0 = arith.constant 0 : i32
    %c0_i32_1 = arith.constant 0 : i32
    return %c0_i32, %c0_i32_0 : i32, i32
  }
  func.func @transform_11(%arg0: i32) -> (i32, i32) {
    %c0_i32 = arith.constant 0 : i32
    %c0_i32_0 = arith.constant 0 : i32
    %c0_i32_1 = arith.constant 0 : i32
    return %c0_i32, %c0_i32_0 : i32, i32
  }
  func.func @transform_12(%arg0: i32) -> (i32, i32) {
    %c0_i32 = arith.constant 0 : i32
    %c0_i32_0 = arith.constant 0 : i32
    %c0_i32_1 = arith.constant 0 : i32
    return %c0_i32, %c0_i32_0 : i32, i32
  }
  func.func @transform_13(%arg0: i32) -> (i32, i32) {
    %c0_i32 = arith.constant 0 : i32
    %c0_i32_0 = arith.constant 0 : i32
    %c0_i32_1 = arith.constant 0 : i32
    return %c0_i32, %c0_i32_0 : i32, i32
  }
  func.func @transform_14(%arg0: i32) -> (i32, i32) {
    %c0_i32 = arith.constant 0 : i32
    %c0_i32_0 = arith.constant 0 : i32
    %c0_i32_1 = arith.constant 0 : i32
    return %c0_i32, %c0_i32_0 : i32, i32
  }
  func.func @transform_15(%arg0: i32) -> (i32, i32) {
    %c0_i32 = arith.constant 0 : i32
    %c0_i32_0 = arith.constant 0 : i32
    %c0_i32_1 = arith.constant 0 : i32
    return %c0_i32, %c0_i32_0 : i32, i32
  }
}

</mosaic_0001>

<bundles_post_ra>
// kernel: tpu_custom_call.1
= control target key start
LH: loop header
LB: loop body
LE: loop exit
PB: predicated region body
PF: predicated region fallthrough
CT: control target
= control target key end

     0   :  { %20 = vsyncpa [#allocation4], 0  ;;  %s3071_s0 = inlined_call_operand.hbm [shape: bf16[8,256], index: 0, kind: input, shape index: {}]   ;;  %s3072_s1 = inlined_call_operand.hbm [shape: bf16[256,512], index: 1, kind: input, shape index: {}]   ;;  %s3073_s2 = inlined_call_operand.hbm [shape: f32[1,512], index: 2, kind: input, shape index: {}]   ;;  %s3074_s3 = inlined_call_operand.hbm [shape: bf16[256,256], index: 3, kind: input, shape index: {}]   ;;  %s3075_s4 = inlined_call_operand.vmem [shape: f32[1,256], index: 4, kind: input, shape index: {}]   ;;  %s3076_s5 = inlined_call_operand.hbm [shape: bf16[256,256], index: 5, kind: input, shape index: {}]   ;;  %s3077_s6 = inlined_call_operand.vmem [shape: f32[1,256], index: 6, kind: input, shape index: {}]   ;;  %s3078_s7 = inlined_call_operand.hbm [shape: bf16[256,256], index: 7, kind: input, shape index: {}]   ;;  %s3079_s8 = inlined_call_operand.vmem [shape: f32[1,256], index: 8, kind: input, shape index: {}]   ;;  %s3080_s9 = inlined_call_operand.hbm [shape: bf16[256,256], index: 9, kind: input, shape index: {}]   ;;  %s3081_s10 = inlined_call_operand.vmem [shape: f32[1,256], index: 10, kind: input, shape index: {}]   ;;  %s3082_s11 = inlined_call_operand.hbm [shape: bf16[256,128], index: 11, kind: input, shape index: {}]   ;;  %s3083_s12 = inlined_call_operand.hbm [shape: bf16[256,128], index: 12, kind: input, shape index: {}]   ;;  %s3084_s13 = inlined_call_operand.vmem [shape: f32[1,128], index: 13, kind: input, shape index: {}]   ;;  %s3085_s14 = inlined_call_operand.vmem [shape: f32[1,128], index: 14, kind: input, shape index: {}]   ;;  %s3086_s15 = inlined_call_operand.hbm [shape: f32[8,128], index: 15, kind: output, shape index: {}]  }
   0x1   :  { %21 = vsyncpa [#allocation7], 0 }
   0x2   :  { %22 = vsyncpa [#allocation10], 0 }
   0x3   :  { %23 = vsyncpa [#allocation13], 0 }
   0x4   :  { %24 = vsyncpa [#allocation16], 0 }
   0x5   :  { %25 = vsyncpa [#allocation5], 0  ;;  %s2895_s18 = smov [#allocation6]  }
   0x6   :  { %s41_s19 = sshll.u32 %s2895_s18, 4  ;;  %s42_s19 = int_to_ptr.vmem [resolvable:$true] %s41_s19 }
   0x7   :  { %s2691_s20 = scalar_lea.vmem %s42_s19, 8192  ;;  %p2696_p1 = scmp.lt.s32.totalorder %s42_s19, %s42_s19 }
   0x8   :  { %p2692_p0 = scmp.ne.s32.totalorder %s42_s19, %s2691_s20  ;;  %p2697_p2 = scmp.lt.s32.totalorder %s2691_s20, %s2691_s20 }
   0xa   :  { %p2698_p3 = por %p2697_p2, %p2696_p1 }
   0xc   :  { %p2699_p4 = pnand %p2698_p3, %p2692_p0 }
   0xe   :  { %2702 = shalt.err (!%p2699_p4)
}
   0xf   :  { %s2896_s21 = smov 256   ;;  %s2897_s22 = smov 16  }
  0x10   :  { %47 = dma.hbm_to_vmem [thread:$0]  %s3072_s1, 8192, %s42_s19, [#allocation7], %s2896_s21, %s2896_s21, %s2897_s22  }
  0x11   :  { %s2898_s25 = smov [#allocation9]  }
  0x12   :  { %s63_s26 = sshll.u32 %s2898_s25, 4  ;;  %s64_s26 = int_to_ptr.vmem [resolvable:$true] %s63_s26 }
  0x13   :  { %s2711_s27 = scalar_lea.vmem %s64_s26, 4096  ;;  %p2716_p6 = scmp.lt.s32.totalorder %s64_s26, %s64_s26 }
  0x14   :  { %p2712_p5 = scmp.ne.s32.totalorder %s64_s26, %s2711_s27  ;;  %p2717_p7 = scmp.lt.s32.totalorder %s2711_s27, %s2711_s27 }
  0x16   :  { %p2718_p8 = por %p2717_p7, %p2716_p6 }
  0x18   :  { %p2719_p9 = pnand %p2718_p8, %p2712_p5 }
  0x1a   :  { %2722 = shalt.err (!%p2719_p9)
}
  0x1b   :  { %s2899_s28 = smov 128   ;;  %s2900_s29 = smov 8  }
  0x1c   :  { %69 = dma.hbm_to_vmem [thread:$0]  %s3074_s3, 4096, %s64_s26, [#allocation10], %s2899_s28, %s2899_s28, %s2900_s29  }
  0x1d   :  { %s2901_s1 = smov [#allocation12]   ;;  %s2902_s18 = smov [#allocation15]  }
  0x1e   :  { %s91_s17 = sshll.u32 %s2901_s1, 4  ;;  %s119_s19 = sshll.u32 %s2902_s18, 4  ;;  %s92_s17 = int_to_ptr.vmem [resolvable:$true] %s91_s17  ;;  %s120_s19 = int_to_ptr.vmem [resolvable:$true] %s119_s19 }
  0x1f   :  { %s2731_s20 = scalar_lea.vmem %s92_s17, 4096  ;;  %p2736_p11 = scmp.lt.s32.totalorder %s92_s17, %s92_s17 }
  0x20   :  { %p2732_p10 = scmp.ne.s32.totalorder %s92_s17, %s2731_s20  ;;  %p2737_p12 = scmp.lt.s32.totalorder %s2731_s20, %s2731_s20 }
  0x22   :  { %p2738_p13 = por %p2737_p12, %p2736_p11 }
  0x24   :  { %p2739_p0 = pnand %p2738_p13, %p2732_p10 }
  0x26   :  { %2742 = shalt.err (!%p2739_p0)
}
  0x27   :  { %97 = dma.hbm_to_vmem [thread:$0]  %s3078_s7, 4096, %s92_s17, [#allocation13], %s2899_s28, %s2899_s28, %s2900_s29  }
  0x28   :  { %s2751_s3 = scalar_lea.vmem %s120_s19, 2048  ;;  %p2756_p2 = scmp.lt.s32.totalorder %s120_s19, %s120_s19 }
  0x29   :  { %p2752_p1 = scmp.ne.s32.totalorder %s120_s19, %s2751_s3  ;;  %p2757_p3 = scmp.lt.s32.totalorder %s2751_s3, %s2751_s3 }
  0x2b   :  { %p2758_p4 = por %p2757_p3, %p2756_p2 }
  0x2d   :  { %p2759_p5 = pnand %p2758_p4, %p2752_p1 }
  0x2f   :  { %2762 = shalt.err (!%p2759_p5)
}
  0x30   :  { %s2903_s23 = smov 64   ;;  %s2904_s24 = smov 4  }
  0x31   :  { %125 = dma.hbm_to_vmem [thread:$0]  %s3082_s11, 2048, %s120_s19, [#allocation16], %s2903_s23, %s2903_s23, %s2904_s24  }
  0x32   :  { %s2905_s27 = smov [#allocation3]   ;;  %s2906_s16 = smov [#allocation8]  }
  0x33   :  { %s32_s30 = sshll.u32 %s2905_s27, 4  ;;  %s54_s7 = sshll.u32 %s2906_s16, 4  ;;  %s33_s30 = int_to_ptr.vmem [resolvable:$true] %s32_s30  ;;  %s55_s7 = int_to_ptr.vmem [resolvable:$true] %s54_s7 }
  0x34   :  { %s2771_s1 = scalar_lea.vmem %s33_s30, 128  ;;  %p2776_p7 = scmp.lt.s32.totalorder %s33_s30, %s33_s30 }
  0x35   :  { %p2772_p6 = scmp.ne.s32.totalorder %s33_s30, %s2771_s1  ;;  %p2777_p8 = scmp.lt.s32.totalorder %s2771_s1, %s2771_s1 }
  0x37   :  { %p2778_p9 = por %p2777_p8, %p2776_p7 }
  0x39   :  { %p2779_p10 = pnand %p2778_p9, %p2772_p6 }
  0x3b   :  { %2782 = shalt.err (!%p2779_p10)
}
  0x3c   :  { %35 = dma.hbm_to_vmem [thread:$0]  %s3071_s0, 128, %s33_s30, [#allocation4]  }
  0x3d   :  { %s2791_s20 = scalar_lea.vmem %s55_s7, 64  ;;  %p2796_p12 = scmp.lt.s32.totalorder %s55_s7, %s55_s7 }
  0x3e   :  { %p2792_p11 = scmp.ne.s32.totalorder %s55_s7, %s2791_s20  ;;  %p2797_p13 = scmp.lt.s32.totalorder %s2791_s20, %s2791_s20 }
  0x40   :  { %p2798_p0 = por %p2797_p13, %p2796_p12 }
  0x42   :  { %p2799_p1 = pnand %p2798_p0, %p2792_p11 }
  0x44   :  { %2802 = shalt.err (!%p2799_p1)
}
  0x45   :  { %57 = dma.hbm_to_vmem [thread:$0]  %s3073_s2, 64, %s55_s7, [#allocation7]  }
  0x46   :  { %s2907_s21 = smov [#allocation11]   ;;  %s2908_s3 = smov [#allocation14]  }
  0x47   :  { %s77_s22 = sshll.u32 %s2907_s21, 4  ;;  %s105_s25 = sshll.u32 %s2908_s3, 4  ;;  %s78_s22 = int_to_ptr.vmem [resolvable:$true] %s77_s22  ;;  %s106_s25 = int_to_ptr.vmem [resolvable:$true] %s105_s25 }
  0x48   :  { %s2811_s26 = scalar_lea.vmem %s78_s22, 4096  ;;  %p2816_p3 = scmp.lt.s32.totalorder %s78_s22, %s78_s22 }
  0x49   :  { %p2812_p2 = scmp.ne.s32.totalorder %s78_s22, %s2811_s26  ;;  %p2817_p4 = scmp.lt.s32.totalorder %s2811_s26, %s2811_s26 }
  0x4b   :  { %p2818_p5 = por %p2817_p4, %p2816_p3 }
  0x4d   :  { %p2819_p6 = pnand %p2818_p5, %p2812_p2 }
  0x4f   :  { %2822 = shalt.err (!%p2819_p6)
}
  0x50   :  { %83 = dma.hbm_to_vmem [thread:$0]  %s3076_s5, 4096, %s78_s22, [#allocation10], %s2899_s28, %s2899_s28, %s2900_s29  }
  0x51   :  { %s2831_s2 = scalar_lea.vmem %s106_s25, 4096  ;;  %p2836_p8 = scmp.lt.s32.totalorder %s106_s25, %s106_s25 }
  0x52   :  { %p2832_p7 = scmp.ne.s32.totalorder %s106_s25, %s2831_s2  ;;  %p2837_p9 = scmp.lt.s32.totalorder %s2831_s2, %s2831_s2 }
  0x54   :  { %p2838_p10 = por %p2837_p9, %p2836_p8 }
  0x56   :  { %p2839_p11 = pnand %p2838_p10, %p2832_p7 }
  0x58   :  { %2842 = shalt.err (!%p2839_p11)
}
  0x59   :  { %111 = dma.hbm_to_vmem [thread:$0]  %s3080_s9, 4096, %s106_s25, [#allocation13], %s2899_s28, %s2899_s28, %s2900_s29  }
  0x5a   :  { %s2909_s7 = smov [#allocation17]  }
  0x5b   :  { %s131_s1 = sshll.u32 %s2909_s7, 4  ;;  %s132_s1 = int_to_ptr.vmem [resolvable:$true] %s131_s1 }
  0x5c   :  { %s2851_s17 = scalar_lea.vmem %s132_s1, 2048  ;;  %p2856_p13 = scmp.lt.s32.totalorder %s132_s1, %s132_s1 }
  0x5d   :  { %p2852_p12 = scmp.ne.s32.totalorder %s132_s1, %s2851_s17  ;;  %p2857_p0 = scmp.lt.s32.totalorder %s2851_s17, %s2851_s17 }
  0x5f   :  { %p2858_p1 = por %p2857_p0, %p2856_p13 }
  0x61   :  { %p2859_p2 = pnand %p2858_p1, %p2852_p12 }
  0x63   :  { %2862 = shalt.err (!%p2859_p2)
}
  0x64   :  { %137 = dma.hbm_to_vmem [thread:$0]  %s3083_s12, 2048, %s132_s1, [#allocation16], %s2903_s23, %s2903_s23, %s2904_s24  }
  0x65   :  { %2883 = dma.done.wait [#allocation4], 128  }
  0x66   :  { %2884 = vsyncadd [#allocation4], 4294967168 }
  0x67   :  { %2885 = dma.done.wait [#allocation7], 8256  }
  0x68   :  { %2886 = vsyncadd [#allocation7], 4294959040 }
  0x69   :  { %2887 = dma.done.wait [#allocation10], 8192  }
  0x6a   :  { %2888 = vsyncadd [#allocation10], 4294959104 }
  0x6b   :  { %2889 = dma.done.wait [#allocation13], 8192  }
  0x6c   :  { %2890 = vsyncadd [#allocation13], 4294959104 }
  0x6d   :  { %2891 = dma.done.wait [#allocation16], 4096  }
  0x6e   :  { %2892 = vsyncadd [#allocation16], 4294963200  ;;  %v2361_v0 = vld [vmem:[#allocation6 + $0xe4] ss:$16 sps:$4 sm:$0xff]   ;;  %v2363_v1 = vld [vmem:[#allocation6 + $0xec] ss:$16 sps:$4 sm:$0xff]  }
  0x6f   :  { %574 = vmatprep.subr.bf16.mxu0 %v2361_v0  ;;  %v2365_v2 = vld [vmem:[#allocation6 + $0xe0] ss:$16 sps:$4 sm:$0xff]   ;;  %v2366_v3 = vld [vmem:[#allocation6 + $0xe8] ss:$16 sps:$4 sm:$0xff]   ;;  %615 = vmatprep.subr.bf16.mxu1 %v2363_v1  ;;  %v2367_v4 = vld [vmem:[#allocation6 + $0xc4] ss:$16 sps:$4 sm:$0xff]  }
  0x70   :  { %575 = vmatpush1.bf16.msra.mxu0 %v2365_v2  ;;  %616 = vmatpush1.bf16.msra.mxu1 %v2366_v3  ;;  %v2369_v5 = vld [vmem:[#allocation6 + $0xcc] ss:$16 sps:$4 sm:$0xff]   ;;  %v2371_v6 = vld [vmem:[#allocation6 + $0xc0] ss:$16 sps:$4 sm:$0xff]   ;;  %v2372_v7 = vld [vmem:[#allocation6 + $0xc8] ss:$16 sps:$4 sm:$0xff]  }
  0x71   :  { %576 = vmatprep.subr.bf16.mxu0 %v2367_v4  ;;  %617 = vmatprep.subr.bf16.mxu1 %v2369_v5  ;;  %v2373_v8 = vld [vmem:[#allocation6 + $0xa4] ss:$16 sps:$4 sm:$0xff]   ;;  %v2375_v9 = vld [vmem:[#allocation6 + $0xac] ss:$16 sps:$4 sm:$0xff]   ;;  %v2377_v10 = vld [vmem:[#allocation6 + $0xa0] ss:$16 sps:$4 sm:$0xff]  }
  0x72   :  { %v2378_v11 = vld [vmem:[#allocation6 + $0xa8] ss:$16 sps:$4 sm:$0xff]   ;;  %v2379_v12 = vld [vmem:[#allocation6 + $0x84] ss:$16 sps:$4 sm:$0xff]   ;;  %v2381_v13 = vld [vmem:[#allocation6 + $0x8c] ss:$16 sps:$4 sm:$0xff]  }
  0x73   :  { %v2383_v14 = vld [vmem:[#allocation6 + $0x80] ss:$16 sps:$4 sm:$0xff]   ;;  %v2384_v15 = vld [vmem:[#allocation6 + $0x88] ss:$16 sps:$4 sm:$0xff]   ;;  %v2385_v16 = vld [vmem:[#allocation6 + $0x64] ss:$16 sps:$4 sm:$0xff]  }
  0x74   :  { %577 = vmatpush1.bf16.msra.mxu0 %v2371_v6  ;;  %618 = vmatpush1.bf16.msra.mxu1 %v2372_v7  ;;  %v2387_v17 = vld [vmem:[#allocation6 + $0x6c] ss:$16 sps:$4 sm:$0xff]   ;;  %v2389_v18 = vld [vmem:[#allocation6 + $0x60] ss:$16 sps:$4 sm:$0xff]   ;;  %v2390_v19 = vld [vmem:[#allocation6 + $0x68] ss:$16 sps:$4 sm:$0xff]  }
  0x75   :  { %578 = vmatprep.subr.bf16.mxu0 %v2373_v8  ;;  %619 = vmatprep.subr.bf16.mxu1 %v2375_v9  ;;  %v2391_v20 = vld [vmem:[#allocation6 + $0x44] ss:$16 sps:$4 sm:$0xff]   ;;  %v2393_v21 = vld [vmem:[#allocation6 + $0x4c] ss:$16 sps:$4 sm:$0xff]   ;;  %v2395_v22 = vld [vmem:[#allocation6 + $0x40] ss:$16 sps:$4 sm:$0xff]  }
  0x76   :  { %v2396_v23 = vld [vmem:[#allocation6 + $0x48] ss:$16 sps:$4 sm:$0xff]   ;;  %v2397_v24 = vld [vmem:[#allocation6 + $0x24] ss:$16 sps:$4 sm:$0xff]   ;;  %v2399_v25 = vld [vmem:[#allocation6 + $0x2c] ss:$16 sps:$4 sm:$0xff]  }
  0x77   :  { %v2401_v26 = vld [vmem:[#allocation6 + $0x20] ss:$16 sps:$4 sm:$0xff]   ;;  %v2402_v27 = vld [vmem:[#allocation6 + $0x28] ss:$16 sps:$4 sm:$0xff]   ;;  %v2403_v28 = vld [vmem:[#allocation6 + $0x4] ss:$16 sps:$4 sm:$0xff]  }
  0x78   :  { %579 = vmatpush1.bf16.msra.mxu0 %v2377_v10  ;;  %620 = vmatpush1.bf16.msra.mxu1 %v2378_v11  ;;  %v2405_v29 = vld [vmem:[#allocation6 + $0xc] ss:$16 sps:$4 sm:$0xff]   ;;  %v2407_v30 = vld [vmem:[#allocation6] ss:$16 sps:$4 sm:$0xff]   ;;  %v2408_v31 = vld [vmem:[#allocation6 + $0x8] ss:$16 sps:$4 sm:$0xff]  }
  0x79   :  { %580 = vmatprep.subr.bf16.mxu0 %v2379_v12  ;;  %621 = vmatprep.subr.bf16.mxu1 %v2381_v13  ;;  %v2409_v32 = vld [vmem:[#allocation6 + $0x1e4] ss:$16 sps:$4 sm:$0xff]   ;;  %v2411_v33 = vld [vmem:[#allocation6 + $0x1ec] ss:$16 sps:$4 sm:$0xff]   ;;  %v2413_v34 = vld [vmem:[#allocation6 + $0x1e0] ss:$16 sps:$4 sm:$0xff]  }
  0x7a   :  { %v2414_v35 = vld [vmem:[#allocation6 + $0x1e8] ss:$16 sps:$4 sm:$0xff]   ;;  %v2415_v36 = vld [vmem:[#allocation6 + $0x1c4] ss:$16 sps:$4 sm:$0xff]   ;;  %v2417_v37 = vld [vmem:[#allocation6 + $0x1cc] ss:$16 sps:$4 sm:$0xff]  }
  0x7b   :  { %v2419_v38 = vld [vmem:[#allocation6 + $0x1c0] ss:$16 sps:$4 sm:$0xff]   ;;  %v2420_v39 = vld [vmem:[#allocation6 + $0x1c8] ss:$16 sps:$4 sm:$0xff]   ;;  %v2421_v40 = vld [vmem:[#allocation6 + $0x1a4] ss:$16 sps:$4 sm:$0xff]  }
  0x7c   :  { %581 = vmatpush1.bf16.msra.mxu0 %v2383_v14  ;;  %622 = vmatpush1.bf16.msra.mxu1 %v2384_v15  ;;  %v2423_v41 = vld [vmem:[#allocation6 + $0x1ac] ss:$16 sps:$4 sm:$0xff]   ;;  %v2425_v42 = vld [vmem:[#allocation6 + $0x1a0] ss:$16 sps:$4 sm:$0xff]   ;;  %v2426_v43 = vld [vmem:[#allocation6 + $0x1a8] ss:$16 sps:$4 sm:$0xff]  }
  0x7d   :  { %582 = vmatprep.subr.bf16.mxu0 %v2385_v16  ;;  %623 = vmatprep.subr.bf16.mxu1 %v2387_v17  ;;  %v2427_v44 = vld [vmem:[#allocation6 + $0x184] ss:$16 sps:$4 sm:$0xff]   ;;  %v2429_v45 = vld [vmem:[#allocation6 + $0x18c] ss:$16 sps:$4 sm:$0xff]   ;;  %v2431_v47 = vld [vmem:[#allocation6 + $0x180] ss:$16 sps:$4 sm:$0xff]  }
  0x7e   :  { %v182_v46 = vld [vmem:[#allocation3] sm:$0xff]  ;;  %v2433_v50 = vld [vmem:[#allocation6 + $0x164] ss:$16 sps:$4 sm:$0xff]   ;;  %v2437_v52 = vld [vmem:[#allocation6 + $0x160] ss:$16 sps:$4 sm:$0xff]   ;;  %s2910_s19 = smov [#allocation18]  }
  0x7f   :  { %v2074_v48 = vcombine.high %v182_v46, %v182_v46  ;;  %v2432_v49 = vld [vmem:[#allocation6 + $0x188] ss:$16 sps:$4 sm:$0xff]   ;;  %v2435_v51 = vld [vmem:[#allocation6 + $0x16c] ss:$16 sps:$4 sm:$0xff]   ;;  %v2439_v54 = vld [vmem:[#allocation6 + $0x144] ss:$16 sps:$4 sm:$0xff]   ;;  %v2073_v4 = vcombine.low %v182_v46, %v182_v46 }
  0x80   :  { %583 = vmatpush1.bf16.msra.mxu0 %v2389_v18  ;;  %624 = vmatpush1.bf16.msra.mxu1 %v2390_v19  ;;  %v2438_v53 = vld [vmem:[#allocation6 + $0x168] ss:$16 sps:$4 sm:$0xff]   ;;  %v2441_v55 = vld [vmem:[#allocation6 + $0x14c] ss:$16 sps:$4 sm:$0xff]   ;;  %v2443_v56 = vld [vmem:[#allocation6 + $0x140] ss:$16 sps:$4 sm:$0xff]  }
  0x81   :  { %584 = vmatprep.subr.bf16.mxu0 %v2391_v20  ;;  %625 = vmatprep.subr.bf16.mxu1 %v2393_v21  ;;  %v2444_v57 = vld [vmem:[#allocation6 + $0x148] ss:$16 sps:$4 sm:$0xff]   ;;  %v2445_v58 = vld [vmem:[#allocation6 + $0x124] ss:$16 sps:$4 sm:$0xff]   ;;  %v2447_v59 = vld [vmem:[#allocation6 + $0x12c] ss:$16 sps:$4 sm:$0xff]  }
  0x82   :  { %606 = vmatprep.mubr.bf16.mxu0 %v2074_v48  ;;  %647 = vmatprep.mubr.bf16.mxu1 %v2074_v48  ;;  %v2449_v60 = vld [vmem:[#allocation6 + $0x120] ss:$16 sps:$4 sm:$0xff]   ;;  %v2450_v61 = vld [vmem:[#allocation6 + $0x128] ss:$16 sps:$4 sm:$0xff]   ;;  %v2451_v62 = vld [vmem:[#allocation6 + $0x104] ss:$16 sps:$4 sm:$0xff]  }
  0x83   :  { %v2453_v63 = vld [vmem:[#allocation6 + $0x10c] ss:$16 sps:$4 sm:$0xff]   ;;  %v2455_v0 = vld [vmem:[#allocation6 + $0x100] ss:$16 sps:$4 sm:$0xff]   ;;  %v2456_v1 = vld [vmem:[#allocation6 + $0x108] ss:$16 sps:$4 sm:$0xff]  }
  0x84   :  { %585 = vmatpush1.bf16.msra.mxu0 %v2395_v22  ;;  %626 = vmatpush1.bf16.msra.mxu1 %v2396_v23  ;;  %v2461_v2 = vld [vmem:[#allocation9 + $0x74] ss:$8 sps:$4 sm:$0xff]   ;;  %v2459_v5 = vld [vmem:[#allocation9 + $0x70] ss:$8 sps:$4 sm:$0xff]   ;;  %v2467_v7 = vld [vmem:[#allocation9 + $0x64] ss:$8 sps:$4 sm:$0xff]  }
  0x85   :  { %586 = vmatprep.subr.bf16.mxu0 %v2397_v24  ;;  %627 = vmatprep.subr.bf16.mxu1 %v2399_v25  ;;  %v2464_v3 = vld [vmem:[#allocation11 + $0x74] ss:$8 sps:$4 sm:$0xff]   ;;  %v2462_v6 = vld [vmem:[#allocation11 + $0x70] ss:$8 sps:$4 sm:$0xff]   ;;  %v2470_v8 = vld [vmem:[#allocation11 + $0x64] ss:$8 sps:$4 sm:$0xff]  }
  0x86   :  { %v2465_v9 = vld [vmem:[#allocation9 + $0x60] ss:$8 sps:$4 sm:$0xff]   ;;  %v2473_v11 = vld [vmem:[#allocation9 + $0x54] ss:$8 sps:$4 sm:$0xff]   ;;  %v2471_v13 = vld [vmem:[#allocation9 + $0x50] ss:$8 sps:$4 sm:$0xff]  }
  0x87   :  { %v2468_v10 = vld [vmem:[#allocation11 + $0x60] ss:$8 sps:$4 sm:$0xff]   ;;  %v2476_v12 = vld [vmem:[#allocation11 + $0x54] ss:$8 sps:$4 sm:$0xff]   ;;  %v2474_v14 = vld [vmem:[#allocation11 + $0x50] ss:$8 sps:$4 sm:$0xff]  }
  0x88   :  { %587 = vmatpush1.bf16.msra.mxu0 %v2401_v26  ;;  %628 = vmatpush1.bf16.msra.mxu1 %v2402_v27  ;;  %v2479_v15 = vld [vmem:[#allocation9 + $0x44] ss:$8 sps:$4 sm:$0xff]   ;;  %v2477_v17 = vld [vmem:[#allocation9 + $0x40] ss:$8 sps:$4 sm:$0xff]   ;;  %v2485_v19 = vld [vmem:[#allocation9 + $0x34] ss:$8 sps:$4 sm:$0xff]  }
  0x89   :  { %588 = vmatprep.subr.bf16.mxu0 %v2403_v28  ;;  %629 = vmatprep.subr.bf16.mxu1 %v2405_v29  ;;  %v2482_v16 = vld [vmem:[#allocation11 + $0x44] ss:$8 sps:$4 sm:$0xff]   ;;  %v2480_v18 = vld [vmem:[#allocation11 + $0x40] ss:$8 sps:$4 sm:$0xff]   ;;  %v2488_v20 = vld [vmem:[#allocation11 + $0x34] ss:$8 sps:$4 sm:$0xff]  }
  0x8a   :  { %v2483_v21 = vld [vmem:[#allocation9 + $0x30] ss:$8 sps:$4 sm:$0xff]   ;;  %v2491_v23 = vld [vmem:[#allocation9 + $0x24] ss:$8 sps:$4 sm:$0xff]   ;;  %v2489_v25 = vld [vmem:[#allocation9 + $0x20] ss:$8 sps:$4 sm:$0xff]  }
  0x8b   :  { %v2486_v22 = vld [vmem:[#allocation11 + $0x30] ss:$8 sps:$4 sm:$0xff]   ;;  %v2494_v24 = vld [vmem:[#allocation11 + $0x24] ss:$8 sps:$4 sm:$0xff]   ;;  %v2492_v26 = vld [vmem:[#allocation11 + $0x20] ss:$8 sps:$4 sm:$0xff]  }
  0x8c   :  { %589 = vmatpush1.bf16.msra.mxu0 %v2407_v30  ;;  %630 = vmatpush1.bf16.msra.mxu1 %v2408_v31  ;;  %v2497_v27 = vld [vmem:[#allocation9 + $0x14] ss:$8 sps:$4 sm:$0xff]   ;;  %v2495_v29 = vld [vmem:[#allocation9 + $0x10] ss:$8 sps:$4 sm:$0xff]   ;;  %v2503_v31 = vld [vmem:[#allocation9 + $0x4] ss:$8 sps:$4 sm:$0xff]  }
  0x8d   :  { %590 = vmatprep.subr.bf16.mxu0 %v2409_v32  ;;  %631 = vmatprep.subr.bf16.mxu1 %v2411_v33  ;;  %v2500_v28 = vld [vmem:[#allocation11 + $0x14] ss:$8 sps:$4 sm:$0xff]   ;;  %v2498_v30 = vld [vmem:[#allocation11 + $0x10] ss:$8 sps:$4 sm:$0xff]   ;;  %v2506_v32 = vld [vmem:[#allocation11 + $0x4] ss:$8 sps:$4 sm:$0xff]  }
  0x8e   :  { %v2501_v33 = vld [vmem:[#allocation9] ss:$8 sps:$4 sm:$0xff]   ;;  %v2522_v46 = vld [vmem:[#allocation11 + $0xd0] ss:$8 sps:$4 sm:$0xff]   ;;  %v2530_v48 = vld [vmem:[#allocation11 + $0xc4] ss:$8 sps:$4 sm:$0xff]  }
  0x8f   :  { %s2060_s21 = sshll.u32 %s2910_s19, 4  ;;  %s2061_s21 = int_to_ptr.vmem [resolvable:$true] %s2060_s21 }
  0x90   :  { %591 = vmatpush2.bf16.msra.mxu0 %v2413_v34  ;;  %632 = vmatpush2.bf16.msra.mxu1 %v2414_v35  ;;  %v2504_v34 = vld [vmem:[#allocation11] ss:$8 sps:$4 sm:$0xff]   ;;  %v2509_v35 = vld [vmem:[#allocation9 + $0xf4] ss:$8 sps:$4 sm:$0xff]   ;;  %s2863_s22 = scalar_lea.vmem %s2061_s21, 128  ;;  %p2868_p4 = scmp.lt.s32.totalorder %s2061_s21, %s2061_s21 }
  0x91   :  { %592 = vmatprep.subr.bf16.mxu0 %v2415_v36  ;;  %633 = vmatprep.subr.bf16.mxu1 %v2417_v37  ;;  %v2512_v36 = vld [vmem:[#allocation11 + $0xf4] ss:$8 sps:$4 sm:$0xff]   ;;  %v2507_v37 = vld [vmem:[#allocation9 + $0xf0] ss:$8 sps:$4 sm:$0xff]   ;;  %p2864_p3 = scmp.ne.s32.totalorder %s2061_s21, %s2863_s22  ;;  %p2869_p5 = scmp.lt.s32.totalorder %s2863_s22, %s2863_s22 }
  0x93   :  { %p2870_p6 = por %p2869_p5, %p2868_p4 }
  0x94   :  { %593 = vmatpush2.bf16.msra.mxu0 %v2419_v38  ;;  %634 = vmatpush2.bf16.msra.mxu1 %v2420_v39  ;;  %v2510_v38 = vld [vmem:[#allocation11 + $0xf0] ss:$8 sps:$4 sm:$0xff]   ;;  %v2515_v39 = vld [vmem:[#allocation9 + $0xe4] ss:$8 sps:$4 sm:$0xff]  }
  0x95   :  { %594 = vmatprep.subr.bf16.mxu0 %v2421_v40  ;;  %635 = vmatprep.subr.bf16.mxu1 %v2423_v41  ;;  %v2518_v40 = vld [vmem:[#allocation11 + $0xe4] ss:$8 sps:$4 sm:$0xff]   ;;  %v2513_v41 = vld [vmem:[#allocation9 + $0xe0] ss:$8 sps:$4 sm:$0xff]   ;;  %p2871_p7 = pnand %p2870_p6, %p2864_p3 }
  0x98   :  { %595 = vmatpush2.bf16.msra.mxu0 %v2425_v42  ;;  %636 = vmatpush2.bf16.msra.mxu1 %v2426_v43  ;;  %v2516_v42 = vld [vmem:[#allocation11 + $0xe0] ss:$8 sps:$4 sm:$0xff]   ;;  %v2521_v43 = vld [vmem:[#allocation9 + $0xd4] ss:$8 sps:$4 sm:$0xff]  }
  0x99   :  { %596 = vmatprep.subr.bf16.mxu0 %v2427_v44  ;;  %637 = vmatprep.subr.bf16.mxu1 %v2429_v45  ;;  %v2524_v44 = vld [vmem:[#allocation11 + $0xd4] ss:$8 sps:$4 sm:$0xff]   ;;  %v2519_v45 = vld [vmem:[#allocation9 + $0xd0] ss:$8 sps:$4 sm:$0xff]  }
  0x9c   :  { %597 = vmatpush2.bf16.msra.mxu0 %v2431_v47  ;;  %638 = vmatpush2.bf16.msra.mxu1 %v2432_v49  ;;  %v2527_v47 = vld [vmem:[#allocation9 + $0xc4] ss:$8 sps:$4 sm:$0xff]   ;;  %v2525_v49 = vld [vmem:[#allocation9 + $0xc0] ss:$8 sps:$4 sm:$0xff]  }
  0x9d   :  { %598 = vmatprep.subr.bf16.mxu0 %v2433_v50  ;;  %639 = vmatprep.subr.bf16.mxu1 %v2435_v51  ;;  %v2528_v50 = vld [vmem:[#allocation11 + $0xc0] ss:$8 sps:$4 sm:$0xff]   ;;  %v2533_v51 = vld [vmem:[#allocation9 + $0xb4] ss:$8 sps:$4 sm:$0xff]  }
  0xa0   :  { %599 = vmatpush2.bf16.msra.mxu0 %v2437_v52  ;;  %640 = vmatpush2.bf16.msra.mxu1 %v2438_v53  ;;  %v2536_v52 = vld [vmem:[#allocation11 + $0xb4] ss:$8 sps:$4 sm:$0xff]   ;;  %v2531_v53 = vld [vmem:[#allocation9 + $0xb0] ss:$8 sps:$4 sm:$0xff]  }
  0xa1   :  { %600 = vmatprep.subr.bf16.mxu0 %v2439_v54  ;;  %641 = vmatprep.subr.bf16.mxu1 %v2441_v55  ;;  %v2534_v54 = vld [vmem:[#allocation11 + $0xb0] ss:$8 sps:$4 sm:$0xff]   ;;  %v2539_v55 = vld [vmem:[#allocation9 + $0xa4] ss:$8 sps:$4 sm:$0xff]  }
  0xa4   :  { %601 = vmatpush2.bf16.msra.mxu0 %v2443_v56  ;;  %642 = vmatpush2.bf16.msra.mxu1 %v2444_v57  ;;  %v2542_v56 = vld [vmem:[#allocation11 + $0xa4] ss:$8 sps:$4 sm:$0xff]   ;;  %v2537_v57 = vld [vmem:[#allocation9 + $0xa0] ss:$8 sps:$4 sm:$0xff]  }
  0xa5   :  { %602 = vmatprep.subr.bf16.mxu0 %v2445_v58  ;;  %643 = vmatprep.subr.bf16.mxu1 %v2447_v59  ;;  %v2540_v58 = vld [vmem:[#allocation11 + $0xa0] ss:$8 sps:$4 sm:$0xff]   ;;  %v2545_v59 = vld [vmem:[#allocation9 + $0x94] ss:$8 sps:$4 sm:$0xff]  }
  0xa8   :  { %603 = vmatpush2.bf16.msra.mxu0 %v2449_v60  ;;  %644 = vmatpush2.bf16.msra.mxu1 %v2450_v61  ;;  %v2548_v60 = vld [vmem:[#allocation11 + $0x94] ss:$8 sps:$4 sm:$0xff]   ;;  %v2543_v61 = vld [vmem:[#allocation9 + $0x90] ss:$8 sps:$4 sm:$0xff]  }
  0xa9   :  { %604 = vmatprep.subr.bf16.mxu0 %v2451_v62  ;;  %645 = vmatprep.subr.bf16.mxu1 %v2453_v63  ;;  %v2546_v62 = vld [vmem:[#allocation11 + $0x90] ss:$8 sps:$4 sm:$0xff]   ;;  %v2551_v63 = vld [vmem:[#allocation9 + $0x84] ss:$8 sps:$4 sm:$0xff]  }
  0xac   :  { %605 = vmatpush2.bf16.msra.mxu0 %v2455_v0  ;;  %646 = vmatpush2.bf16.msra.mxu1 %v2456_v1  ;;  %v2554_v0 = vld [vmem:[#allocation11 + $0x84] ss:$8 sps:$4 sm:$0xff]   ;;  %v2549_v1 = vld [vmem:[#allocation9 + $0x80] ss:$8 sps:$4 sm:$0xff]  }
  0xad   :  { %909 = vmatprep.subr.bf16.mxu0 %v2461_v2  ;;  %1158 = vmatprep.subr.bf16.mxu1 %v2464_v3  ;;  %v2552_v2 = vld [vmem:[#allocation11 + $0x80] ss:$8 sps:$4 sm:$0xff]   ;;  %v2557_v3 = vld [vmem:[#allocation12 + $0x74] ss:$8 sps:$4 sm:$0xff]  }
  0xaf   :  { %607 = vmatmul.mubr.bf16.vlgmr.msra.gmra.mxu0 %v2073_v4  ;;  %648 = vmatmul.mubr.bf16.vlgmr.msra.gmra.mxu1 %v2073_v4  ;;  %v2560_v4 = vld [vmem:[#allocation14 + $0x74] ss:$8 sps:$4 sm:$0xff]  }
  0xb0   :  { %910 = vmatpush1.bf16.msra.mxu0 %v2459_v5  ;;  %1159 = vmatpush1.bf16.msra.mxu1 %v2462_v6  ;;  %v673_v5 = vlaneseq }
  0xb1   :  { %911 = vmatprep.subr.bf16.mxu0 %v2467_v7  ;;  %1160 = vmatprep.subr.bf16.mxu1 %v2470_v8 }
  0xb2   :  { %v674_v6 = vshrl.u32 %v673_v5, 7  ;;  %v2606_v5 = vld [vmem:[#allocation14 + $0xf0] ss:$8 sps:$4 sm:$0xff]  }
  0xb4   :  { %912 = vmatpush1.bf16.msra.mxu0 %v2465_v9  ;;  %1161 = vmatpush1.bf16.msra.mxu1 %v2468_v10  ;;  %v3036_v7 = vsub.s32 0, %v674_v6  ;;  %v683_v8 = vsub.s32 2, %v674_v6  ;;  %v671_v9 = vld [vmem:[#allocation8] sm:$0xf]  ;;  %v3038_v10 = vsub.s32 1, %v674_v6 }
  0xb5   :  { %913 = vmatprep.subr.bf16.mxu0 %v2473_v11  ;;  %1162 = vmatprep.subr.bf16.mxu1 %v2476_v12  ;;  %v687_v11 = vsub.s32 3, %v674_v6  ;;  %v2611_v6 = vld [vmem:[#allocation12 + $0xe4] ss:$8 sps:$4 sm:$0xff]  }
  0xb6   :  { %v676_v12 = vrot.slane %v671_v9, %v3036_v7 }
  0xb8   :  { %914 = vmatpush1.bf16.msra.mxu0 %v2471_v13  ;;  %1163 = vmatpush1.bf16.msra.mxu1 %v2474_v14  ;;  %v684_v13 = vrot.slane %v671_v9, %v683_v8  ;;  %v680_v14 = vrot.slane %v671_v9, %v3038_v10  ;;  %v2614_v8 = vld [vmem:[#allocation14 + $0xe4] ss:$8 sps:$4 sm:$0xff]  }
  0xb9   :  { %915 = vmatprep.subr.bf16.mxu0 %v2479_v15  ;;  %1164 = vmatprep.subr.bf16.mxu1 %v2482_v16  ;;  %v688_v15 = vrot.slane %v671_v9, %v687_v11  ;;  %v2609_v9 = vld [vmem:[#allocation12 + $0xe0] ss:$8 sps:$4 sm:$0xff]  }
  0xba   :  { %v2612_v11 = vld [vmem:[#allocation14 + $0xe0] ss:$8 sps:$4 sm:$0xff]  }
  0xbc   :  { %916 = vmatpush1.bf16.msra.mxu0 %v2477_v17  ;;  %1165 = vmatpush1.bf16.msra.mxu1 %v2480_v18 }
  0xbd   :  { %917 = vmatprep.subr.bf16.mxu0 %v2485_v19  ;;  %1166 = vmatprep.subr.bf16.mxu1 %v2488_v20 }
  0xc0   :  { %918 = vmatpush1.bf16.msra.mxu0 %v2483_v21  ;;  %1167 = vmatpush1.bf16.msra.mxu1 %v2486_v22 }
  0xc1   :  { %919 = vmatprep.subr.bf16.mxu0 %v2491_v23  ;;  %1168 = vmatprep.subr.bf16.mxu1 %v2494_v24 }
  0xc4   :  { %920 = vmatpush1.bf16.msra.mxu0 %v2489_v25  ;;  %1169 = vmatpush1.bf16.msra.mxu1 %v2492_v26 }
  0xc5   :  { %921 = vmatprep.subr.bf16.mxu0 %v2497_v27  ;;  %1170 = vmatprep.subr.bf16.mxu1 %v2500_v28 }
  0xc8   :  { %922 = vmatpush1.bf16.msra.mxu0 %v2495_v29  ;;  %1171 = vmatpush1.bf16.msra.mxu1 %v2498_v30 }
  0xc9   :  { %923 = vmatprep.subr.bf16.mxu0 %v2503_v31  ;;  %1172 = vmatprep.subr.bf16.mxu1 %v2506_v32 }
  0xcc   :  { %924 = vmatpush1.bf16.msra.mxu0 %v2501_v33  ;;  %1173 = vmatpush1.bf16.msra.mxu1 %v2504_v34  ;;  %v2555_v34 = vld [vmem:[#allocation12 + $0x70] ss:$8 sps:$4 sm:$0xff]  }
  0xcd   :  { %925 = vmatprep.subr.bf16.mxu0 %v2509_v35  ;;  %1174 = vmatprep.subr.bf16.mxu1 %v2512_v36  ;;  %v2558_v35 = vld [vmem:[#allocation14 + $0x70] ss:$8 sps:$4 sm:$0xff]  }
  0xd0   :  { %926 = vmatpush2.bf16.msra.mxu0 %v2507_v37  ;;  %1175 = vmatpush2.bf16.msra.mxu1 %v2510_v38  ;;  %v2563_v38 = vld [vmem:[#allocation12 + $0x64] ss:$8 sps:$4 sm:$0xff]  }
  0xd1   :  { %927 = vmatprep.subr.bf16.mxu0 %v2515_v39  ;;  %1176 = vmatprep.subr.bf16.mxu1 %v2518_v40  ;;  %v2566_v39 = vld [vmem:[#allocation14 + $0x64] ss:$8 sps:$4 sm:$0xff]   ;;  %v2561_v40 = vld [vmem:[#allocation12 + $0x60] ss:$8 sps:$4 sm:$0xff]  }
  0xd4   :  { %928 = vmatpush2.bf16.msra.mxu0 %v2513_v41  ;;  %1177 = vmatpush2.bf16.msra.mxu1 %v2516_v42  ;;  %v2564_v41 = vld [vmem:[#allocation14 + $0x60] ss:$8 sps:$4 sm:$0xff]   ;;  %v2569_v42 = vld [vmem:[#allocation12 + $0x54] ss:$8 sps:$4 sm:$0xff]  }
  0xd5   :  { %929 = vmatprep.subr.bf16.mxu0 %v2521_v43  ;;  %1178 = vmatprep.subr.bf16.mxu1 %v2524_v44  ;;  %v2572_v43 = vld [vmem:[#allocation14 + $0x54] ss:$8 sps:$4 sm:$0xff]   ;;  %v2567_v44 = vld [vmem:[#allocation12 + $0x50] ss:$8 sps:$4 sm:$0xff]  }
  0xd8   :  { %930 = vmatpush2.bf16.msra.mxu0 %v2519_v45  ;;  %1179 = vmatpush2.bf16.msra.mxu1 %v2522_v46  ;;  %v2570_v45 = vld [vmem:[#allocation14 + $0x50] ss:$8 sps:$4 sm:$0xff]   ;;  %v2575_v46 = vld [vmem:[#allocation12 + $0x44] ss:$8 sps:$4 sm:$0xff]  }
  0xd9   :  { %931 = vmatprep.subr.bf16.mxu0 %v2527_v47  ;;  %1180 = vmatprep.subr.bf16.mxu1 %v2530_v48  ;;  %v2578_v47 = vld [vmem:[#allocation14 + $0x44] ss:$8 sps:$4 sm:$0xff]   ;;  %v2573_v48 = vld [vmem:[#allocation12 + $0x40] ss:$8 sps:$4 sm:$0xff]  }
  0xdc   :  { %932 = vmatpush2.bf16.msra.mxu0 %v2525_v49  ;;  %1181 = vmatpush2.bf16.msra.mxu1 %v2528_v50  ;;  %v2576_v49 = vld [vmem:[#allocation14 + $0x40] ss:$8 sps:$4 sm:$0xff]   ;;  %v2581_v50 = vld [vmem:[#allocation12 + $0x34] ss:$8 sps:$4 sm:$0xff]  }
  0xdd   :  { %933 = vmatprep.subr.bf16.mxu0 %v2533_v51  ;;  %1182 = vmatprep.subr.bf16.mxu1 %v2536_v52  ;;  %v2584_v51 = vld [vmem:[#allocation14 + $0x34] ss:$8 sps:$4 sm:$0xff]   ;;  %v2579_v52 = vld [vmem:[#allocation12 + $0x30] ss:$8 sps:$4 sm:$0xff]  }
  0xe0   :  { %934 = vmatpush2.bf16.msra.mxu0 %v2531_v53  ;;  %1183 = vmatpush2.bf16.msra.mxu1 %v2534_v54  ;;  %v2582_v53 = vld [vmem:[#allocation14 + $0x30] ss:$8 sps:$4 sm:$0xff]   ;;  %v2587_v54 = vld [vmem:[#allocation12 + $0x24] ss:$8 sps:$4 sm:$0xff]  }
  0xe1   :  { %935 = vmatprep.subr.bf16.mxu0 %v2539_v55  ;;  %1184 = vmatprep.subr.bf16.mxu1 %v2542_v56  ;;  %v2590_v55 = vld [vmem:[#allocation14 + $0x24] ss:$8 sps:$4 sm:$0xff]   ;;  %v2585_v56 = vld [vmem:[#allocation12 + $0x20] ss:$8 sps:$4 sm:$0xff]  }
  0xe4   :  { %936 = vmatpush2.bf16.msra.mxu0 %v2537_v57  ;;  %1185 = vmatpush2.bf16.msra.mxu1 %v2540_v58  ;;  %v2588_v57 = vld [vmem:[#allocation14 + $0x20] ss:$8 sps:$4 sm:$0xff]   ;;  %v2593_v58 = vld [vmem:[#allocation12 + $0x14] ss:$8 sps:$4 sm:$0xff]  }
  0xe5   :  { %937 = vmatprep.subr.bf16.mxu0 %v2545_v59  ;;  %1186 = vmatprep.subr.bf16.mxu1 %v2548_v60  ;;  %v2596_v59 = vld [vmem:[#allocation14 + $0x14] ss:$8 sps:$4 sm:$0xff]   ;;  %v2591_v60 = vld [vmem:[#allocation12 + $0x10] ss:$8 sps:$4 sm:$0xff]  }
  0xe8   :  { %938 = vmatpush2.bf16.msra.mxu0 %v2543_v61  ;;  %1187 = vmatpush2.bf16.msra.mxu1 %v2546_v62  ;;  %v2594_v61 = vld [vmem:[#allocation14 + $0x10] ss:$8 sps:$4 sm:$0xff]   ;;  %v2599_v62 = vld [vmem:[#allocation12 + $0x4] ss:$8 sps:$4 sm:$0xff]  }
  0xe9   :  { %939 = vmatprep.subr.bf16.mxu0 %v2551_v63  ;;  %1188 = vmatprep.subr.bf16.mxu1 %v2554_v0  ;;  %v2602_v63 = vld [vmem:[#allocation14 + $0x4] ss:$8 sps:$4 sm:$0xff]   ;;  %v2597_v0 = vld [vmem:[#allocation12] ss:$8 sps:$4 sm:$0xff]  }
  0xec   :  { %940 = vmatpush2.bf16.msra.mxu0 %v2549_v1  ;;  %1189 = vmatpush2.bf16.msra.mxu1 %v2552_v2  ;;  %v2600_v1 = vld [vmem:[#allocation14] ss:$8 sps:$4 sm:$0xff]   ;;  %v2605_v2 = vld [vmem:[#allocation12 + $0xf4] ss:$8 sps:$4 sm:$0xff]  }
  0xed   :  { %1407 = vmatprep.subr.bf16.mxu0 %v2557_v3  ;;  %1656 = vmatprep.subr.bf16.mxu1 %v2560_v4  ;;  %v2608_v3 = vld [vmem:[#allocation14 + $0xf4] ss:$8 sps:$4 sm:$0xff]   ;;  %v2603_v4 = vld [vmem:[#allocation12 + $0xf0] ss:$8 sps:$4 sm:$0xff]  }
 0x16f   :  { %v608_v16 = vpop.f32.mrf.mxu0  ;;  %v649_v17 = vpop.f32.mrf.mxu1 }
 0x170   :  { %v693_v18 = vadd.f32 %v676_v12, %v608_v16  ;;  %v695_v19 = vadd.f32 %v684_v13, %v649_v17  ;;  %v2617_v12 = vld [vmem:[#allocation12 + $0xd4] ss:$8 sps:$4 sm:$0xff]   ;;  %v2623_v16 = vld [vmem:[#allocation12 + $0xc4] ss:$8 sps:$4 sm:$0xff]  }
 0x171   :  { %v610_v20 = vpop.f32.mrf.mxu0  ;;  %v651_v21 = vpop.f32.mrf.mxu1  ;;  %v2620_v13 = vld [vmem:[#allocation14 + $0xd4] ss:$8 sps:$4 sm:$0xff]   ;;  %v2626_v17 = vld [vmem:[#allocation14 + $0xc4] ss:$8 sps:$4 sm:$0xff]  }
 0x172   :  { %v694_v22 = vadd.f32 %v680_v14, %v610_v20  ;;  %v696_v23 = vadd.f32 %v688_v15, %v651_v21  ;;  %v697_v24 = vmax.f32 %v693_v18, 0.0  ;;  %v699_v25 = vmax.f32 %v695_v19, 0.0  ;;  %v2615_v14 = vld [vmem:[#allocation12 + $0xd0] ss:$8 sps:$4 sm:$0xff]   ;;  %v2621_v18 = vld [vmem:[#allocation12 + $0xc0] ss:$8 sps:$4 sm:$0xff]  }
 0x173   :  { %v612_v26 = vpop.f32.mrf.mxu0  ;;  %v653_v27 = vpop.f32.mrf.mxu1  ;;  %v2618_v15 = vld [vmem:[#allocation14 + $0xd0] ss:$8 sps:$4 sm:$0xff]   ;;  %v2624_v19 = vld [vmem:[#allocation14 + $0xc0] ss:$8 sps:$4 sm:$0xff]   ;;  %v2629_v20 = vld [vmem:[#allocation12 + $0xb4] ss:$8 sps:$4 sm:$0xff]  }
 0x174   :  { %v698_v28 = vmax.f32 %v694_v22, 0.0  ;;  %v700_v29 = vmax.f32 %v696_v23, 0.0  ;;  %v701_v36 = vpack.c.bf16 %v697_v24, %v697_v24  ;;  %v703_v37 = vpack.c.bf16 %v699_v25, %v699_v25  ;;  %v2632_v21 = vld [vmem:[#allocation14 + $0xb4] ss:$8 sps:$4 sm:$0xff]   ;;  %v2627_v22 = vld [vmem:[#allocation12 + $0xb0] ss:$8 sps:$4 sm:$0xff]  }
 0x175   :  { %v613_v30 = vpop.f32.mrf.mxu0  ;;  %v654_v31 = vpop.f32.mrf.mxu1  ;;  %v2630_v23 = vld [vmem:[#allocation14 + $0xb0] ss:$8 sps:$4 sm:$0xff]   ;;  %v2635_v24 = vld [vmem:[#allocation12 + $0xa4] ss:$8 sps:$4 sm:$0xff]   ;;  %v2633_v26 = vld [vmem:[#allocation12 + $0xa0] ss:$8 sps:$4 sm:$0xff]  }
 0x176   :  { %v702_v32 = vpack.c.bf16 %v698_v28, %v698_v28  ;;  %v704_v33 = vpack.c.bf16 %v700_v29, %v700_v29  ;;  %v2638_v25 = vld [vmem:[#allocation14 + $0xa4] ss:$8 sps:$4 sm:$0xff]   ;;  %v2636_v27 = vld [vmem:[#allocation14 + $0xa0] ss:$8 sps:$4 sm:$0xff]   ;;  %v2641_v28 = vld [vmem:[#allocation12 + $0x94] ss:$8 sps:$4 sm:$0xff]  }
 0x177   :  { %v2644_v29 = vld [vmem:[#allocation14 + $0x94] ss:$8 sps:$4 sm:$0xff]   ;;  %v2639_v30 = vld [vmem:[#allocation12 + $0x90] ss:$8 sps:$4 sm:$0xff]  }
 0x178   :  { %941 = vmatprep.mubr.bf16.mxu0 %v702_v32  ;;  %1190 = vmatprep.mubr.bf16.mxu1 %v704_v33  ;;  %v2642_v31 = vld [vmem:[#allocation14 + $0x90] ss:$8 sps:$4 sm:$0xff]   ;;  %v2647_v32 = vld [vmem:[#allocation12 + $0x84] ss:$8 sps:$4 sm:$0xff]  }
 0x179   :  { %942 = vmatmul.mubr.bf16.vlgmr.msra.gmra.mxu0 %v701_v36  ;;  %1191 = vmatmul.mubr.bf16.vlgmr.msra.gmra.mxu1 %v703_v37  ;;  %v2650_v33 = vld [vmem:[#allocation14 + $0x84] ss:$8 sps:$4 sm:$0xff]   ;;  %v2651_v36 = vld [vmem:[#allocation17 + $0x78] sm:$0xff]  }
 0x17a   :  { %1408 = vmatpush1.bf16.msra.mxu0 %v2555_v34  ;;  %1657 = vmatpush1.bf16.msra.mxu1 %v2558_v35  ;;  %v2645_v34 = vld [vmem:[#allocation12 + $0x80] ss:$8 sps:$4 sm:$0xff]   ;;  %v2652_v37 = vld [vmem:[#allocation15 + $0x78] sm:$0xff]  }
 0x17b   :  { %1409 = vmatprep.subr.bf16.mxu0 %v2563_v38  ;;  %1658 = vmatprep.subr.bf16.mxu1 %v2566_v39  ;;  %v2648_v35 = vld [vmem:[#allocation14 + $0x80] ss:$8 sps:$4 sm:$0xff]   ;;  %v737_v38 = vld [vmem:[%s3075_s4] sm:$0x3] }
 0x17c   :  { %v986_v39 = vld [vmem:[%s3077_s6] sm:$0x3] }
 0x17e   :  { %1410 = vmatpush1.bf16.msra.mxu0 %v2561_v40  ;;  %1659 = vmatpush1.bf16.msra.mxu1 %v2564_v41  ;;  %v742_v40 = vrot.slane %v737_v38, %v3036_v7  ;;  %v991_v41 = vrot.slane %v986_v39, %v3036_v7 }
 0x17f   :  { %1411 = vmatprep.subr.bf16.mxu0 %v2569_v42  ;;  %1660 = vmatprep.subr.bf16.mxu1 %v2572_v43  ;;  %v746_v42 = vrot.slane %v737_v38, %v3038_v10  ;;  %v995_v43 = vrot.slane %v986_v39, %v3038_v10 }
 0x182   :  { %1412 = vmatpush1.bf16.msra.mxu0 %v2567_v44  ;;  %1661 = vmatpush1.bf16.msra.mxu1 %v2570_v45 }
 0x183   :  { %1413 = vmatprep.subr.bf16.mxu0 %v2575_v46  ;;  %1662 = vmatprep.subr.bf16.mxu1 %v2578_v47 }
 0x186   :  { %1414 = vmatpush1.bf16.msra.mxu0 %v2573_v48  ;;  %1663 = vmatpush1.bf16.msra.mxu1 %v2576_v49 }
 0x187   :  { %1415 = vmatprep.subr.bf16.mxu0 %v2581_v50  ;;  %1664 = vmatprep.subr.bf16.mxu1 %v2584_v51 }
 0x18a   :  { %1416 = vmatpush1.bf16.msra.mxu0 %v2579_v52  ;;  %1665 = vmatpush1.bf16.msra.mxu1 %v2582_v53 }
 0x18b   :  { %1417 = vmatprep.subr.bf16.mxu0 %v2587_v54  ;;  %1666 = vmatprep.subr.bf16.mxu1 %v2590_v55 }
 0x18e   :  { %1418 = vmatpush1.bf16.msra.mxu0 %v2585_v56  ;;  %1667 = vmatpush1.bf16.msra.mxu1 %v2588_v57 }
 0x18f   :  { %1419 = vmatprep.subr.bf16.mxu0 %v2593_v58  ;;  %1668 = vmatprep.subr.bf16.mxu1 %v2596_v59 }
 0x192   :  { %1420 = vmatpush1.bf16.msra.mxu0 %v2591_v60  ;;  %1669 = vmatpush1.bf16.msra.mxu1 %v2594_v61 }
 0x193   :  { %1421 = vmatprep.subr.bf16.mxu0 %v2599_v62  ;;  %1670 = vmatprep.subr.bf16.mxu1 %v2602_v63  ;;  %v2653_v62 = vld [vmem:[#allocation17 + $0x38] sm:$0xff]  }
 0x194   :  { %v2654_v63 = vld [vmem:[#allocation15 + $0x38] sm:$0xff]  }
 0x196   :  { %1422 = vmatpush1.bf16.msra.mxu0 %v2597_v0  ;;  %1671 = vmatpush1.bf16.msra.mxu1 %v2600_v1 }
 0x197   :  { %1423 = vmatprep.subr.bf16.mxu0 %v2605_v2  ;;  %1672 = vmatprep.subr.bf16.mxu1 %v2608_v3  ;;  %v2655_v2 = vld [vmem:[#allocation17 + $0x70] sm:$0xff]  }
 0x198   :  { %v2656_v3 = vld [vmem:[#allocation15 + $0x70] sm:$0xff]  }
 0x19a   :  { %1424 = vmatpush2.bf16.msra.mxu0 %v2603_v4  ;;  %1673 = vmatpush2.bf16.msra.mxu1 %v2606_v5  ;;  %v2657_v4 = vld [vmem:[#allocation17 + $0x30] sm:$0xff]  }
 0x19b   :  { %1425 = vmatprep.subr.bf16.mxu0 %v2611_v6  ;;  %1674 = vmatprep.subr.bf16.mxu1 %v2614_v8  ;;  %v2658_v5 = vld [vmem:[#allocation15 + $0x30] sm:$0xff]   ;;  %v2659_v6 = vld [vmem:[#allocation17 + $0x68] sm:$0xff]  }
 0x19c   :  { %v2660_v8 = vld [vmem:[#allocation15 + $0x68] sm:$0xff]  }
 0x19e   :  { %1426 = vmatpush2.bf16.msra.mxu0 %v2609_v9  ;;  %1675 = vmatpush2.bf16.msra.mxu1 %v2612_v11  ;;  %v2661_v9 = vld [vmem:[#allocation17 + $0x28] sm:$0xff]  }
 0x19f   :  { %1427 = vmatprep.subr.bf16.mxu0 %v2617_v12  ;;  %1676 = vmatprep.subr.bf16.mxu1 %v2620_v13  ;;  %v2662_v11 = vld [vmem:[#allocation15 + $0x28] sm:$0xff]   ;;  %v2663_v12 = vld [vmem:[#allocation17 + $0x60] sm:$0xff]  }
 0x1a0   :  { %v2664_v13 = vld [vmem:[#allocation15 + $0x60] sm:$0xff]  }
 0x1a2   :  { %1428 = vmatpush2.bf16.msra.mxu0 %v2615_v14  ;;  %1677 = vmatpush2.bf16.msra.mxu1 %v2618_v15  ;;  %v2665_v14 = vld [vmem:[#allocation17 + $0x20] sm:$0xff]  }
 0x1a3   :  { %1429 = vmatprep.subr.bf16.mxu0 %v2623_v16  ;;  %1678 = vmatprep.subr.bf16.mxu1 %v2626_v17  ;;  %v2666_v15 = vld [vmem:[#allocation15 + $0x20] sm:$0xff]   ;;  %v2667_v16 = vld [vmem:[#allocation17 + $0x58] sm:$0xff]  }
 0x1a4   :  { %v2668_v17 = vld [vmem:[#allocation15 + $0x58] sm:$0xff]  }
 0x1a6   :  { %1430 = vmatpush2.bf16.msra.mxu0 %v2621_v18  ;;  %1679 = vmatpush2.bf16.msra.mxu1 %v2624_v19  ;;  %v2669_v18 = vld [vmem:[#allocation17 + $0x18] sm:$0xff]  }
 0x1a7   :  { %1431 = vmatprep.subr.bf16.mxu0 %v2629_v20  ;;  %1680 = vmatprep.subr.bf16.mxu1 %v2632_v21  ;;  %v2670_v19 = vld [vmem:[#allocation15 + $0x18] sm:$0xff]   ;;  %v2671_v20 = vld [vmem:[#allocation17 + $0x50] sm:$0xff]  }
 0x1a8   :  { %v2672_v21 = vld [vmem:[#allocation15 + $0x50] sm:$0xff]  }
 0x1aa   :  { %1432 = vmatpush2.bf16.msra.mxu0 %v2627_v22  ;;  %1681 = vmatpush2.bf16.msra.mxu1 %v2630_v23  ;;  %v2673_v22 = vld [vmem:[#allocation17 + $0x10] sm:$0xff]  }
 0x1ab   :  { %1433 = vmatprep.subr.bf16.mxu0 %v2635_v24  ;;  %1682 = vmatprep.subr.bf16.mxu1 %v2638_v25  ;;  %v2674_v23 = vld [vmem:[#allocation15 + $0x10] sm:$0xff]   ;;  %v2675_v24 = vld [vmem:[#allocation17 + $0x48] sm:$0xff]  }
 0x1ac   :  { %v2676_v25 = vld [vmem:[#allocation15 + $0x48] sm:$0xff]  }
 0x1ae   :  { %1434 = vmatpush2.bf16.msra.mxu0 %v2633_v26  ;;  %1683 = vmatpush2.bf16.msra.mxu1 %v2636_v27  ;;  %v2677_v26 = vld [vmem:[#allocation17 + $0x8] sm:$0xff]  }
 0x1af   :  { %1435 = vmatprep.subr.bf16.mxu0 %v2641_v28  ;;  %1684 = vmatprep.subr.bf16.mxu1 %v2644_v29  ;;  %v2678_v27 = vld [vmem:[#allocation15 + $0x8] sm:$0xff]   ;;  %v2679_v28 = vld [vmem:[#allocation17 + $0x40] sm:$0xff]  }
 0x1b0   :  { %v2680_v29 = vld [vmem:[#allocation15 + $0x40] sm:$0xff]  }
 0x1b2   :  { %1436 = vmatpush2.bf16.msra.mxu0 %v2639_v30  ;;  %1685 = vmatpush2.bf16.msra.mxu1 %v2642_v31  ;;  %v2681_v30 = vld [vmem:[#allocation17] sm:$0xff]  }
 0x1b3   :  { %1437 = vmatprep.subr.bf16.mxu0 %v2647_v32  ;;  %1686 = vmatprep.subr.bf16.mxu1 %v2650_v33  ;;  %v2682_v31 = vld [vmem:[#allocation15] sm:$0xff]   ;;  %v1235_v32 = vld [vmem:[%s3079_s8] sm:$0x3] }
 0x1b4   :  { %v1484_v33 = vld [vmem:[%s3081_s10] sm:$0x3] }
 0x1b6   :  { %1438 = vmatpush2.bf16.msra.mxu0 %v2645_v34  ;;  %1687 = vmatpush2.bf16.msra.mxu1 %v2648_v35  ;;  %v1240_v34 = vrot.slane %v1235_v32, %v3036_v7  ;;  %v1489_v35 = vrot.slane %v1484_v33, %v3036_v7 }
 0x1b7   :  { %2301 = vmatprep.subr.bf16.mxu0 %v2651_v36  ;;  %2323 = vmatprep.subr.bf16.mxu1 %v2652_v37  ;;  %v1244_v36 = vrot.slane %v1235_v32, %v3038_v10  ;;  %v1493_v37 = vrot.slane %v1484_v33, %v3038_v10 }
 0x239   :  { %v943_v44 = vpop.f32.mrf.mxu0  ;;  %v1192_v45 = vpop.f32.mrf.mxu1 }
 0x23a   :  { %v944_v46 = vadd.f32 %v943_v44, %v742_v40  ;;  %v1193_v47 = vadd.f32 %v1192_v45, %v991_v41 }
 0x23b   :  { %v945_v48 = vpop.f32.mrf.mxu0  ;;  %v1194_v49 = vpop.f32.mrf.mxu1 }
 0x23c   :  { %v946_v50 = vadd.f32 %v945_v48, %v746_v42  ;;  %v1195_v51 = vadd.f32 %v1194_v49, %v995_v43  ;;  %v950_v52 = vmax.f32 %v944_v46, 0.0  ;;  %v1199_v53 = vmax.f32 %v1193_v47, 0.0 }
 0x23d   :  { %v947_v54 = vpop.f32.mrf.mxu0  ;;  %v1196_v55 = vpop.f32.mrf.mxu1 }
 0x23e   :  { %v951_v56 = vmax.f32 %v946_v50, 0.0  ;;  %v1200_v57 = vmax.f32 %v1195_v51, 0.0  ;;  %v952_v0 = vpack.c.bf16 %v950_v52, %v950_v52  ;;  %v1201_v1 = vpack.c.bf16 %v1199_v53, %v1199_v53 }
 0x23f   :  { %v948_v58 = vpop.f32.mrf.mxu0  ;;  %v1197_v59 = vpop.f32.mrf.mxu1 }
 0x240   :  { %v953_v60 = vpack.c.bf16 %v951_v56, %v951_v56  ;;  %v1202_v61 = vpack.c.bf16 %v1200_v57, %v1200_v57 }
 0x242   :  { %1439 = vmatprep.mubr.bf16.mxu0 %v953_v60  ;;  %1688 = vmatprep.mubr.bf16.mxu1 %v1202_v61 }
 0x243   :  { %1440 = vmatmul.mubr.bf16.vlgmr.msra.gmra.mxu0 %v952_v0  ;;  %1689 = vmatmul.mubr.bf16.vlgmr.msra.gmra.mxu1 %v1201_v1 }
 0x244   :  { %2302 = vmatpush3.bf16.msra.mxu0 %v2653_v62  ;;  %2324 = vmatpush3.bf16.msra.mxu1 %v2654_v63  ;;  %v2299_v62 = vld [vmem:[%s3084_s13] ss:$0 sm:$0xff] }
 0x245   :  { %2303 = vmatprep.subr.bf16.mxu0 %v2655_v2  ;;  %2325 = vmatprep.subr.bf16.mxu1 %v2656_v3 }
 0x248   :  { %2304 = vmatpush3.bf16.msra.mxu0 %v2657_v4  ;;  %2326 = vmatpush3.bf16.msra.mxu1 %v2658_v5  ;;  %v2300_v4 = vld [vmem:[%s3085_s14] ss:$0 sm:$0xff] }
 0x249   :  { %2305 = vmatprep.subr.bf16.mxu0 %v2659_v6  ;;  %2327 = vmatprep.subr.bf16.mxu1 %v2660_v8 }
 0x24c   :  { %2306 = vmatpush3.bf16.msra.mxu0 %v2661_v9  ;;  %2328 = vmatpush3.bf16.msra.mxu1 %v2662_v11 }
 0x24d   :  { %2307 = vmatprep.subr.bf16.mxu0 %v2663_v12  ;;  %2329 = vmatprep.subr.bf16.mxu1 %v2664_v13 }
 0x250   :  { %2308 = vmatpush3.bf16.msra.mxu0 %v2665_v14  ;;  %2330 = vmatpush3.bf16.msra.mxu1 %v2666_v15 }
 0x251   :  { %2309 = vmatprep.subr.bf16.mxu0 %v2667_v16  ;;  %2331 = vmatprep.subr.bf16.mxu1 %v2668_v17 }
 0x254   :  { %2310 = vmatpush3.bf16.msra.mxu0 %v2669_v18  ;;  %2332 = vmatpush3.bf16.msra.mxu1 %v2670_v19 }
 0x255   :  { %2311 = vmatprep.subr.bf16.mxu0 %v2671_v20  ;;  %2333 = vmatprep.subr.bf16.mxu1 %v2672_v21 }
 0x258   :  { %2312 = vmatpush3.bf16.msra.mxu0 %v2673_v22  ;;  %2334 = vmatpush3.bf16.msra.mxu1 %v2674_v23 }
 0x259   :  { %2313 = vmatprep.subr.bf16.mxu0 %v2675_v24  ;;  %2335 = vmatprep.subr.bf16.mxu1 %v2676_v25 }
 0x25c   :  { %2314 = vmatpush3.bf16.msra.mxu0 %v2677_v26  ;;  %2336 = vmatpush3.bf16.msra.mxu1 %v2678_v27 }
 0x25d   :  { %2315 = vmatprep.subr.bf16.mxu0 %v2679_v28  ;;  %2337 = vmatprep.subr.bf16.mxu1 %v2680_v29 }
 0x260   :  { %2316 = vmatpush3.bf16.msra.mxu0 %v2681_v30  ;;  %2338 = vmatpush3.bf16.msra.mxu1 %v2682_v31 }
 0x303   :  { %v1441_v38 = vpop.f32.mrf.mxu0  ;;  %v1690_v39 = vpop.f32.mrf.mxu1 }
 0x304   :  { %v1442_v40 = vadd.f32 %v1441_v38, %v1240_v34  ;;  %v1691_v41 = vadd.f32 %v1690_v39, %v1489_v35 }
 0x305   :  { %v1443_v42 = vpop.f32.mrf.mxu0  ;;  %v1692_v43 = vpop.f32.mrf.mxu1 }
 0x306   :  { %v1444_v44 = vadd.f32 %v1443_v42, %v1244_v36  ;;  %v1693_v45 = vadd.f32 %v1692_v43, %v1493_v37  ;;  %v1448_v46 = vmax.f32 %v1442_v40, 0.0  ;;  %v1697_v47 = vmax.f32 %v1691_v41, 0.0 }
 0x307   :  { %v1445_v48 = vpop.f32.mrf.mxu0  ;;  %v1694_v49 = vpop.f32.mrf.mxu1 }
 0x308   :  { %v1449_v50 = vmax.f32 %v1444_v44, 0.0  ;;  %v1698_v51 = vmax.f32 %v1693_v45, 0.0  ;;  %v1450_v55 = vpack.c.bf16 %v1448_v46, %v1448_v46  ;;  %v1699_v10 = vpack.c.bf16 %v1697_v47, %v1697_v47 }
 0x309   :  { %v1446_v52 = vpop.f32.mrf.mxu0  ;;  %v1695_v7 = vpop.f32.mrf.mxu1 }
 0x30a   :  { %v1451_v53 = vpack.c.bf16 %v1449_v50, %v1449_v50  ;;  %v1700_v54 = vpack.c.bf16 %v1698_v51, %v1698_v51 }
 0x30c   :  { %1893 = vmatprep.mubr.bf16.mxu0 %v1700_v54  ;;  %2029 = vmatprep.mubr.bf16.mxu1 %v1451_v53 }
 0x30d   :  { %1894 = vmatmul.mubr.bf16.vlgmr.msra.gmra.mxu0 %v1699_v10  ;;  %2030 = vmatmul.mubr.bf16.vlgmr.msra.gmra.mxu1 %v1450_v55 }
 0x3cd   :  { %v2317_v56 = vpop.f32.mrf.mxu0  ;;  %v2339_v57 = vpop.f32.mrf.mxu1 }
 0x3cf   :  { %v2318_v58 = vpop.f32.mrf.mxu0  ;;  %v2340_v59 = vpop.f32.mrf.mxu1 }
 0x3d0   :  { %v2319_v60 = vadd.f32 %v2318_v58, %v2317_v56  ;;  %v2341_v61 = vadd.f32 %v2340_v59, %v2339_v57 }
 0x3d1   :  { %v2320_v63 = vpop.f32.mrf.mxu0  ;;  %v2342_v0 = vpop.f32.mrf.mxu1 }
 0x3d2   :  { %v2032_v1 = vadd.f32 %v2341_v61, %v2319_v60 }
 0x3d3   :  { %v2321_v2 = vpop.f32.mrf.mxu0  ;;  %v2343_v3 = vpop.f32.mrf.mxu1 }
 0x3d4   :  { %v2045_v5 = vmax.f32 %v2299_v62, %v2032_v1 }
 0x3d6   :  { %v2052_v6 = vmin.f32 %v2300_v4, %v2045_v5 }
 0x3d8   :  { %2053 = vst [vmem:[#allocation18] sm:$0xff] %v2052_v6 }
 0x3d9   :  { %2874 = shalt.err (!%p2871_p7)
}
 0x3da   :  { %2063 = dma.vmem_to_hbm [thread:$0]  %s2061_s21, 128, %s3086_s15, [#allocation5]  }
 0x3db   :  { %2893 = dma.done.wait [#allocation5], 128  }
 0x3dc   :  { %2894 = vsyncadd [#allocation5], 4294967168 }
 0x3dd   :  { %2067 = vsyncpa [#allocation4], 1 }
 0x3de   :  { %2068 = vsyncpa [#allocation7], 1 }
 0x3df   :  { %2069 = vsyncpa [#allocation10], 1 }
 0x3e0   :  { %2070 = vsyncpa [#allocation13], 1 }
 0x3e1   :  { %2071 = vsyncpa [#allocation16], 1 }
 0x3e2   :  { %2072 = vsyncpa [#allocation5], 1 }

</bundles_post_ra>
